<compile_context>
chip_gen: v5e
topology: v5e:2x2
jax: 0.10.0
libtpu: 0.0.40
codegen_flags: <defaults>
</compile_context>

<pallas_src>
import functools

import jax
import jax.numpy as jnp
from jax.experimental import pallas as pl
from jax.experimental.pallas import tpu as pltpu

_BN_EPS = 1e-5


# ------------------------------ fused kernel --------------------------------


def _sab_kernel(x_ref, pool_ref, mfull_ref, mhalf_ref,
                w_c1_ref, p_c1_ref, w_c2_ref, p_c2_ref,
                w_a1_ref, p_a1_ref, w_a2_ref, p_a2_ref,
                o_ref, *, W):
    f32 = jnp.float32
    bf16 = jnp.bfloat16
    Wh = W // 2

    x = x_ref[...]                       # (cin, n_full) f32
    pool_mat = pool_ref[...]             # (n_full, n_half) bf16
    mask_full = mfull_ref[...]           # (9, n_full) f32, static border masks
    mask_half = mhalf_ref[...]           # (9, n_half) f32

    def conv3x3(act, w_ref, bias, masks, w_img):
        """3x3 / stride-1 / pad-1 conv, im2col-fused into a single MXU matmul.

        act:   (c_in, n) f32, lane-flattened b*h*w
        w_ref: (cout, 9*c_in) bf16, tap-major columns (tap = kh*3 + kw)
        bias:  (cout, 1) f32
        masks: (9, n) f32 precomputed border masks for this resolution
        """
        n = act.shape[-1]
        cols = []
        for kh in range(3):
            for kw in range(3):
                t = kh * 3 + kw
                delta = (kh - 1) * w_img + (kw - 1)
                if delta == 0:
                    cols.append(act)                                   # center tap
                else:
                    shifted = pltpu.roll(act, (-delta) % n, axis=1)
                    cols.append(shifted * masks[t:t + 1, :])
        stacked = jnp.concatenate(cols, axis=0).astype(bf16)           # (9*cin, n)
        y = jnp.dot(w_ref[...], stacked, preferred_element_type=f32)   # (cout, n)
        return y + bias

    def bn_relu(y, gamma, beta):
        # training-mode BatchNorm2d: biased batch stats over all N*H*W lanes,
        # two-pass (centered) variance to avoid catastrophic cancellation.
        mean = jnp.mean(y, axis=-1, keepdims=True)
        cy = y - mean
        var = jnp.maximum(jnp.mean(cy * cy, axis=-1, keepdims=True), 0.0)
        scale = gamma * jax.lax.rsqrt(var + _BN_EPS)
        return jnp.maximum(cy * scale + beta, 0.0)

    def conv_block(act, w1_ref, p1_ref, w2_ref, p2_ref, masks, w_img):
        y = conv3x3(act, w1_ref, p1_ref[0], masks, w_img)
        y = bn_relu(y, p1_ref[1], p1_ref[2])
        y = conv3x3(y, w2_ref, p2_ref[0], masks, w_img)
        y = bn_relu(y, p2_ref[1], p2_ref[2])
        return y

    # ---- residual path (full resolution) ----
    x_res = conv_block(x, w_c1_ref, p_c1_ref, w_c2_ref, p_c2_ref, mask_full, W)

    # ---- attention path: avgpool(2,2) -> conv_block -> nearest upsample(2x) ----
    y = jnp.dot(x.astype(bf16), pool_mat, preferred_element_type=f32)   # (cin, n_half)
    y = conv_block(y, w_a1_ref, p_a1_ref, w_a2_ref, p_a2_ref, mask_half, Wh)
    y_up = jax.lax.dot_general(                                         # (cout, n_full)
        y.astype(bf16), pool_mat,
        dimension_numbers=(((1,), (1,)), ((), ())),
        preferred_element_type=f32) * 4.0

    # ---- gate: y * x_res + y ----
    o_ref[...] = (y_up * x_res + y_up).astype(o_ref.dtype)


# ------------------------------ host wrapper ---------------------------------


def _prep_conv(w, b, g, beta):
    """PyTorch (cout, cin, 3, 3) conv weight -> im2col (cout, 9*cin) bf16;
    bias/gamma/beta stacked as (3, cout, 1) f32."""
    co, ci = w.shape[0], w.shape[1]
    w2 = jnp.transpose(w, (0, 2, 3, 1)).reshape(co, 9 * ci).astype(jnp.bfloat16)
    prm = jnp.stack([b, g, beta], axis=0).reshape(3, co, 1).astype(jnp.float32)
    return w2, prm


def _full_spec(shape):
    return pl.BlockSpec(shape, lambda i: (0,) * len(shape))


def _border_masks(h_img, w_img, n):
    """Static (9, n) border masks for a 3x3 / pad-1 conv on lane-flattened b*h*w."""
    pp = jnp.arange(n, dtype=jnp.int32)
    h = (pp % (h_img * w_img)) // w_img
    w = pp % w_img
    rows = []
    for kh in range(3):
        for kw in range(3):
            dh, dw = kh - 1, kw - 1
            ok = ((h + dh >= 0) & (h + dh < h_img) &
                  (w + dw >= 0) & (w + dw < w_img))
            rows.append(ok.astype(jnp.float32))
    return jnp.stack(rows, axis=0)


@jax.jit
def squeeze_attention_block(x_nchw, params):
    """x_nchw: (B, ch_in, H, W) float -> (B, ch_out, H, W), matching PyTorch."""
    B, cin, H, W = x_nchw.shape
    cout = params["conv"]["w1"].shape[0]
    if H % 2 or W % 2:
        raise ValueError("SqueezeAttentionBlock needs even H and W "
                         "(AvgPool2d(2) / Upsample(2x)).")
    HW = H * W
    Hh, Wh = H // 2, W // 2
    HWh = Hh * Wh
    n_full = B * HW
    n_half = B * HWh

    # lane-dense layout: channels on sublanes, flattened B*H*W on lanes
    x2 = jnp.transpose(x_nchw, (1, 0, 2, 3)).reshape(cin, n_full).astype(jnp.float32)

    # ---- static trace-time pool/upsample selection matrix & border masks ----
    p = jnp.arange(n_full, dtype=jnp.int32)
    b_idx, lp = p // HW, p % HW
    hh, ww = lp // W, lp % W
    q = b_idx * HWh + (hh // 2) * Wh + (ww // 2)
    pool_mat = ((q[:, None] == jnp.arange(n_half, dtype=jnp.int32)[None, :])
                .astype(jnp.float32) * 0.25).astype(jnp.bfloat16)       # (n_full, n_half)

    mask_full = _border_masks(H, W, n_full)                             # (9, n_full)
    mask_half = _border_masks(Hh, Wh, n_half)                           # (9, n_half)

    pc, pa = params["conv"], params["conv_atten"]
    w_c1, p_c1 = _prep_conv(pc["w1"], pc["b1"], pc["g1"], pc["be1"])
    w_c2, p_c2 = _prep_conv(pc["w2"], pc["b2"], pc["g2"], pc["be2"])
    w_a1, p_a1 = _prep_conv(pa["w1"], pa["b1"], pa["g1"], pa["be1"])
    w_a2, p_a2 = _prep_conv(pa["w2"], pa["b2"], pa["g2"], pa["be2"])

    args = (x2, pool_mat, mask_full, mask_half,
            w_c1, p_c1, w_c2, p_c2, w_a1, p_a1, w_a2, p_a2)

    # advisory cost / VMEM budget
    flops = (2 * n_full * cout * 9 * cin + 2 * n_full * cout * 9 * cout +
             2 * n_half * cout * 9 * cin + 2 * n_half * cout * 9 * cout +
             2 * cin * n_full * n_half + 2 * cout * n_full * n_half)
    io_bytes = sum(a.size * a.dtype.itemsize for a in args) + cout * n_full * 4
    cost = pl.CostEstimate(flops=int(flops), transcendentals=int(8 * cout),
                           bytes_accessed=int(io_bytes))
    vmem_limit = int(min(48 * 2**20, max(32 * 2**20, 6 * io_bytes)))

    kern = functools.partial(_sab_kernel, W=W)
    out = pl.pallas_call(
        kern,
        out_shape=jax.ShapeDtypeStruct((cout, n_full), jnp.float32),
        grid=(1,),
        in_specs=[_full_spec(a.shape) for a in args],
        out_specs=_full_spec((cout, n_full)),
        compiler_params=pltpu.CompilerParams(
            dimension_semantics=("arbitrary",),
            vmem_limit_bytes=vmem_limit),
        cost_estimate=cost,
    )(*args)

    return jnp.transpose(out.reshape(cout, B, H, W), (1, 0, 2, 3))


# ------------------------------ parameter init -------------------------------


def init_conv_block_params(key, ch_in, ch_out):
    ks = jax.random.split(key, 8)
    s1 = 1.0 / jnp.sqrt(9.0 * ch_in)
    s2 = 1.0 / jnp.sqrt(9.0 * ch_out)
    return {
        "w1": jax.random.normal(ks[0], (ch_out, ch_in, 3, 3), jnp.float32) * s1,
        "b1": jax.random.normal(ks[1], (ch_out,), jnp.float32) * s1,
        "g1": 1.0 + 0.1 * jax.random.normal(ks[2], (ch_out,), jnp.float32),
        "be1": 0.1 * jax.random.normal(ks[3], (ch_out,), jnp.float32),
        "w2": jax.random.normal(ks[4], (ch_out, ch_out, 3, 3), jnp.float32) * s2,
        "b2": jax.random.normal(ks[5], (ch_out,), jnp.float32) * s2,
        "g2": 1.0 + 0.1 * jax.random.normal(ks[6], (ch_out,), jnp.float32),
        "be2": 0.1 * jax.random.normal(ks[7], (ch_out,), jnp.float32),
    }


def init_params(key, ch_in, ch_out):
    k1, k2 = jax.random.split(key)
    return {
        "conv": init_conv_block_params(k1, ch_in, ch_out),
        "conv_atten": init_conv_block_params(k2, ch_in, ch_out),
    }


# ---------------------------------- main -------------------------------------

if __name__ == "__main__":
    key = jax.random.PRNGKey(0)
    kx, kp = jax.random.split(key)

    B, ch_in, ch_out, H, W = 2, 4, 8, 16, 16
    x = jax.random.normal(kx, (B, ch_in, H, W), jnp.float32)   # NCHW, like PyTorch
    params = init_params(kp, ch_in, ch_out)

    out = squeeze_attention_block(x, params)
    out = jax.block_until_ready(out)
    assert out.shape == (B, ch_out, H, W)
    assert bool(jnp.all(jnp.isfinite(out)))
    print("KERNEL_OK")
</pallas_src>

<mosaic_0001>
module attributes {stable_mosaic.version = 11 : i64} {
  func.func @_sab_kernel(%arg0: i32, %arg1: memref<4x512xf32, #tpu.memory_space<vmem>>, %arg2: memref<512x128xbf16, #tpu.memory_space<vmem>>, %arg3: memref<9x512xf32, #tpu.memory_space<vmem>>, %arg4: memref<9x128xf32, #tpu.memory_space<vmem>>, %arg5: memref<8x36xbf16, #tpu.memory_space<vmem>>, %arg6: memref<3x8x1xf32, #tpu.memory_space<vmem>>, %arg7: memref<8x72xbf16, #tpu.memory_space<vmem>>, %arg8: memref<3x8x1xf32, #tpu.memory_space<vmem>>, %arg9: memref<8x36xbf16, #tpu.memory_space<vmem>>, %arg10: memref<3x8x1xf32, #tpu.memory_space<vmem>>, %arg11: memref<8x72xbf16, #tpu.memory_space<vmem>>, %arg12: memref<3x8x1xf32, #tpu.memory_space<vmem>>, %arg13: memref<8x512xf32, #tpu.memory_space<vmem>>) attributes {dimension_semantics = [#tpu.dimension_semantics<arbitrary>], iteration_bounds = array<i64: 1>, scalar_prefetch = 0 : i64, scratch_operands = 0 : i64, tpu.core_type = #tpu.core_type<tc>, window_params = [{pipeline_mode = #tpu.pipeline_mode<synchronous>, transform_indices = @transform_0, window_bounds = array<i64: 4, 512>}, {pipeline_mode = #tpu.pipeline_mode<synchronous>, transform_indices = @transform_1, window_bounds = array<i64: 512, 128>}, {pipeline_mode = #tpu.pipeline_mode<synchronous>, transform_indices = @transform_2, window_bounds = array<i64: 9, 512>}, {pipeline_mode = #tpu.pipeline_mode<synchronous>, transform_indices = @transform_3, window_bounds = array<i64: 9, 128>}, {pipeline_mode = #tpu.pipeline_mode<synchronous>, transform_indices = @transform_4, window_bounds = array<i64: 8, 36>}, {pipeline_mode = #tpu.pipeline_mode<synchronous>, transform_indices = @transform_5, window_bounds = array<i64: 3, 8, 1>}, {pipeline_mode = #tpu.pipeline_mode<synchronous>, transform_indices = @transform_6, window_bounds = array<i64: 8, 72>}, {pipeline_mode = #tpu.pipeline_mode<synchronous>, transform_indices = @transform_7, window_bounds = array<i64: 3, 8, 1>}, {pipeline_mode = #tpu.pipeline_mode<synchronous>, transform_indices = @transform_8, window_bounds = array<i64: 8, 36>}, {pipeline_mode = #tpu.pipeline_mode<synchronous>, transform_indices = @transform_9, window_bounds = array<i64: 3, 8, 1>}, {pipeline_mode = #tpu.pipeline_mode<synchronous>, transform_indices = @transform_10, window_bounds = array<i64: 8, 72>}, {pipeline_mode = #tpu.pipeline_mode<synchronous>, transform_indices = @transform_11, window_bounds = array<i64: 3, 8, 1>}, {pipeline_mode = #tpu.pipeline_mode<synchronous>, transform_indices = @transform_12, window_bounds = array<i64: 8, 512>}]} {
    %c0 = arith.constant 0 : index
    %c0_0 = arith.constant 0 : index
    %0 = vector.load %arg1[%c0, %c0_0] : memref<4x512xf32, #tpu.memory_space<vmem>>, vector<4x512xf32>
    %c0_1 = arith.constant 0 : index
    %c0_2 = arith.constant 0 : index
    %1 = vector.load %arg2[%c0_1, %c0_2] : memref<512x128xbf16, #tpu.memory_space<vmem>>, vector<512x128xbf16>
    %c0_3 = arith.constant 0 : index
    %c0_4 = arith.constant 0 : index
    %2 = vector.load %arg3[%c0_3, %c0_4] : memref<9x512xf32, #tpu.memory_space<vmem>>, vector<9x512xf32>
    %c0_5 = arith.constant 0 : index
    %c0_6 = arith.constant 0 : index
    %3 = vector.load %arg4[%c0_5, %c0_6] : memref<9x128xf32, #tpu.memory_space<vmem>>, vector<9x128xf32>
    %c0_7 = arith.constant 0 : index
    %c0_8 = arith.constant 0 : index
    %c0_9 = arith.constant 0 : index
    %4 = vector.load %arg6[%c0_7, %c0_8, %c0_9] : memref<3x8x1xf32, #tpu.memory_space<vmem>>, vector<1x8x1xf32>
    %5 = vector.shape_cast %4 : vector<1x8x1xf32> to vector<8x1xf32>
    %c17_i32 = arith.constant 17 : i32
    %6 = tpu.dynamic_rotate %0 by %c17_i32 dim 1 : vector<4x512xf32>, i32 -> vector<4x512xf32>
    %7 = vector.extract_strided_slice %2 {offsets = [0, 0], sizes = [1, 512], strides = [1, 1]} : vector<9x512xf32> to vector<1x512xf32>
    %8 = vector.broadcast %7 : vector<1x512xf32> to vector<4x512xf32>
    %9 = arith.mulf %6, %8 : vector<4x512xf32>
    %c16_i32 = arith.constant 16 : i32
    %10 = tpu.dynamic_rotate %0 by %c16_i32 dim 1 : vector<4x512xf32>, i32 -> vector<4x512xf32>
    %11 = vector.extract_strided_slice %2 {offsets = [1, 0], sizes = [1, 512], strides = [1, 1]} : vector<9x512xf32> to vector<1x512xf32>
    %12 = vector.broadcast %11 : vector<1x512xf32> to vector<4x512xf32>
    %13 = arith.mulf %10, %12 : vector<4x512xf32>
    %c15_i32 = arith.constant 15 : i32
    %14 = tpu.dynamic_rotate %0 by %c15_i32 dim 1 : vector<4x512xf32>, i32 -> vector<4x512xf32>
    %15 = vector.extract_strided_slice %2 {offsets = [2, 0], sizes = [1, 512], strides = [1, 1]} : vector<9x512xf32> to vector<1x512xf32>
    %16 = vector.broadcast %15 : vector<1x512xf32> to vector<4x512xf32>
    %17 = arith.mulf %14, %16 : vector<4x512xf32>
    %c1_i32 = arith.constant 1 : i32
    %18 = tpu.dynamic_rotate %0 by %c1_i32 dim 1 : vector<4x512xf32>, i32 -> vector<4x512xf32>
    %19 = vector.extract_strided_slice %2 {offsets = [3, 0], sizes = [1, 512], strides = [1, 1]} : vector<9x512xf32> to vector<1x512xf32>
    %20 = vector.broadcast %19 : vector<1x512xf32> to vector<4x512xf32>
    %21 = arith.mulf %18, %20 : vector<4x512xf32>
    %c511_i32 = arith.constant 511 : i32
    %22 = tpu.dynamic_rotate %0 by %c511_i32 dim 1 : vector<4x512xf32>, i32 -> vector<4x512xf32>
    %23 = vector.extract_strided_slice %2 {offsets = [5, 0], sizes = [1, 512], strides = [1, 1]} : vector<9x512xf32> to vector<1x512xf32>
    %24 = vector.broadcast %23 : vector<1x512xf32> to vector<4x512xf32>
    %25 = arith.mulf %22, %24 : vector<4x512xf32>
    %c497_i32 = arith.constant 497 : i32
    %26 = tpu.dynamic_rotate %0 by %c497_i32 dim 1 : vector<4x512xf32>, i32 -> vector<4x512xf32>
    %27 = vector.extract_strided_slice %2 {offsets = [6, 0], sizes = [1, 512], strides = [1, 1]} : vector<9x512xf32> to vector<1x512xf32>
    %28 = vector.broadcast %27 : vector<1x512xf32> to vector<4x512xf32>
    %29 = arith.mulf %26, %28 : vector<4x512xf32>
    %c496_i32 = arith.constant 496 : i32
    %30 = tpu.dynamic_rotate %0 by %c496_i32 dim 1 : vector<4x512xf32>, i32 -> vector<4x512xf32>
    %31 = vector.extract_strided_slice %2 {offsets = [7, 0], sizes = [1, 512], strides = [1, 1]} : vector<9x512xf32> to vector<1x512xf32>
    %32 = vector.broadcast %31 : vector<1x512xf32> to vector<4x512xf32>
    %33 = arith.mulf %30, %32 : vector<4x512xf32>
    %c495_i32 = arith.constant 495 : i32
    %34 = tpu.dynamic_rotate %0 by %c495_i32 dim 1 : vector<4x512xf32>, i32 -> vector<4x512xf32>
    %35 = vector.extract_strided_slice %2 {offsets = [8, 0], sizes = [1, 512], strides = [1, 1]} : vector<9x512xf32> to vector<1x512xf32>
    %36 = vector.broadcast %35 : vector<1x512xf32> to vector<4x512xf32>
    %37 = arith.mulf %34, %36 : vector<4x512xf32>
    %38 = tpu.concatenate %9, %13, %17, %21, %0, %25, %29, %33, %37 in 0 : vector<4x512xf32>, vector<4x512xf32>, vector<4x512xf32>, vector<4x512xf32>, vector<4x512xf32>, vector<4x512xf32>, vector<4x512xf32>, vector<4x512xf32>, vector<4x512xf32> -> vector<36x512xf32>
    %39 = arith.truncf %38 : vector<36x512xf32> to vector<36x512xbf16>
    %c0_10 = arith.constant 0 : index
    %c0_11 = arith.constant 0 : index
    %40 = vector.load %arg5[%c0_10, %c0_11] : memref<8x36xbf16, #tpu.memory_space<vmem>>, vector<8x36xbf16>
    %cst = arith.constant dense<0.000000e+00> : vector<8x512xf32>
    %41 = tpu.matmul %40, %39, %cst {dimension_numbers = #tpu.dot_dimension_numbers<[1], [0], [0], [1], [0, 0, 1, 1], [], []>} : vector<8x36xbf16>, vector<36x512xbf16>, vector<8x512xf32> -> vector<8x512xf32>
    %42 = vector.broadcast %5 : vector<8x1xf32> to vector<8x512xf32>
    %43 = arith.addf %41, %42 : vector<8x512xf32>
    %c1 = arith.constant 1 : index
    %c0_12 = arith.constant 0 : index
    %c0_13 = arith.constant 0 : index
    %44 = vector.load %arg6[%c1, %c0_12, %c0_13] : memref<3x8x1xf32, #tpu.memory_space<vmem>>, vector<1x8x1xf32>
    %45 = vector.shape_cast %44 : vector<1x8x1xf32> to vector<8x1xf32>
    %c2 = arith.constant 2 : index
    %c0_14 = arith.constant 0 : index
    %c0_15 = arith.constant 0 : index
    %46 = vector.load %arg6[%c2, %c0_14, %c0_15] : memref<3x8x1xf32, #tpu.memory_space<vmem>>, vector<1x8x1xf32>
    %47 = vector.shape_cast %46 : vector<1x8x1xf32> to vector<8x1xf32>
    %cst_16 = arith.constant dense<0.000000e+00> : vector<8xf32>
    %48 = vector.multi_reduction <add>, %43, %cst_16 [1] : vector<8x512xf32> to vector<8xf32>
    %49 = vector.shape_cast %48 : vector<8xf32> to vector<8x1xf32>
    %cst_17 = arith.constant 5.120000e+02 : f32
    %50 = vector.broadcast %cst_17 : f32 to vector<8x1xf32>
    %51 = arith.divf %49, %50 : vector<8x1xf32>
    %52 = vector.broadcast %51 : vector<8x1xf32> to vector<8x512xf32>
    %53 = arith.subf %43, %52 : vector<8x512xf32>
    %54 = arith.mulf %53, %53 : vector<8x512xf32>
    %cst_18 = arith.constant dense<0.000000e+00> : vector<8xf32>
    %55 = vector.multi_reduction <add>, %54, %cst_18 [1] : vector<8x512xf32> to vector<8xf32>
    %56 = vector.shape_cast %55 : vector<8xf32> to vector<8x1xf32>
    %cst_19 = arith.constant 5.120000e+02 : f32
    %57 = vector.broadcast %cst_19 : f32 to vector<8x1xf32>
    %58 = arith.divf %56, %57 : vector<8x1xf32>
    %cst_20 = arith.constant 0.000000e+00 : f32
    %59 = vector.broadcast %cst_20 : f32 to vector<8x1xf32>
    %60 = arith.maximumf %58, %59 : vector<8x1xf32>
    %cst_21 = arith.constant 9.99999974E-6 : f32
    %61 = vector.broadcast %cst_21 : f32 to vector<8x1xf32>
    %62 = arith.addf %60, %61 : vector<8x1xf32>
    %63 = math.rsqrt %62 : vector<8x1xf32>
    %64 = arith.mulf %45, %63 : vector<8x1xf32>
    %65 = vector.broadcast %64 : vector<8x1xf32> to vector<8x512xf32>
    %66 = arith.mulf %53, %65 : vector<8x512xf32>
    %67 = vector.broadcast %47 : vector<8x1xf32> to vector<8x512xf32>
    %68 = arith.addf %66, %67 : vector<8x512xf32>
    %cst_22 = arith.constant 0.000000e+00 : f32
    %69 = vector.broadcast %cst_22 : f32 to vector<8x512xf32>
    %70 = arith.maximumf %68, %69 : vector<8x512xf32>
    %c0_23 = arith.constant 0 : index
    %c0_24 = arith.constant 0 : index
    %c0_25 = arith.constant 0 : index
    %71 = vector.load %arg8[%c0_23, %c0_24, %c0_25] : memref<3x8x1xf32, #tpu.memory_space<vmem>>, vector<1x8x1xf32>
    %72 = vector.shape_cast %71 : vector<1x8x1xf32> to vector<8x1xf32>
    %c17_i32_26 = arith.constant 17 : i32
    %73 = tpu.dynamic_rotate %70 by %c17_i32_26 dim 1 : vector<8x512xf32>, i32 -> vector<8x512xf32>
    %74 = vector.extract_strided_slice %2 {offsets = [0, 0], sizes = [1, 512], strides = [1, 1]} : vector<9x512xf32> to vector<1x512xf32>
    %75 = vector.broadcast %74 : vector<1x512xf32> to vector<8x512xf32>
    %76 = arith.mulf %73, %75 : vector<8x512xf32>
    %c16_i32_27 = arith.constant 16 : i32
    %77 = tpu.dynamic_rotate %70 by %c16_i32_27 dim 1 : vector<8x512xf32>, i32 -> vector<8x512xf32>
    %78 = vector.extract_strided_slice %2 {offsets = [1, 0], sizes = [1, 512], strides = [1, 1]} : vector<9x512xf32> to vector<1x512xf32>
    %79 = vector.broadcast %78 : vector<1x512xf32> to vector<8x512xf32>
    %80 = arith.mulf %77, %79 : vector<8x512xf32>
    %c15_i32_28 = arith.constant 15 : i32
    %81 = tpu.dynamic_rotate %70 by %c15_i32_28 dim 1 : vector<8x512xf32>, i32 -> vector<8x512xf32>
    %82 = vector.extract_strided_slice %2 {offsets = [2, 0], sizes = [1, 512], strides = [1, 1]} : vector<9x512xf32> to vector<1x512xf32>
    %83 = vector.broadcast %82 : vector<1x512xf32> to vector<8x512xf32>
    %84 = arith.mulf %81, %83 : vector<8x512xf32>
    %c1_i32_29 = arith.constant 1 : i32
    %85 = tpu.dynamic_rotate %70 by %c1_i32_29 dim 1 : vector<8x512xf32>, i32 -> vector<8x512xf32>
    %86 = vector.extract_strided_slice %2 {offsets = [3, 0], sizes = [1, 512], strides = [1, 1]} : vector<9x512xf32> to vector<1x512xf32>
    %87 = vector.broadcast %86 : vector<1x512xf32> to vector<8x512xf32>
    %88 = arith.mulf %85, %87 : vector<8x512xf32>
    %c511_i32_30 = arith.constant 511 : i32
    %89 = tpu.dynamic_rotate %70 by %c511_i32_30 dim 1 : vector<8x512xf32>, i32 -> vector<8x512xf32>
    %90 = vector.extract_strided_slice %2 {offsets = [5, 0], sizes = [1, 512], strides = [1, 1]} : vector<9x512xf32> to vector<1x512xf32>
    %91 = vector.broadcast %90 : vector<1x512xf32> to vector<8x512xf32>
    %92 = arith.mulf %89, %91 : vector<8x512xf32>
    %c497_i32_31 = arith.constant 497 : i32
    %93 = tpu.dynamic_rotate %70 by %c497_i32_31 dim 1 : vector<8x512xf32>, i32 -> vector<8x512xf32>
    %94 = vector.extract_strided_slice %2 {offsets = [6, 0], sizes = [1, 512], strides = [1, 1]} : vector<9x512xf32> to vector<1x512xf32>
    %95 = vector.broadcast %94 : vector<1x512xf32> to vector<8x512xf32>
    %96 = arith.mulf %93, %95 : vector<8x512xf32>
    %c496_i32_32 = arith.constant 496 : i32
    %97 = tpu.dynamic_rotate %70 by %c496_i32_32 dim 1 : vector<8x512xf32>, i32 -> vector<8x512xf32>
    %98 = vector.extract_strided_slice %2 {offsets = [7, 0], sizes = [1, 512], strides = [1, 1]} : vector<9x512xf32> to vector<1x512xf32>
    %99 = vector.broadcast %98 : vector<1x512xf32> to vector<8x512xf32>
    %100 = arith.mulf %97, %99 : vector<8x512xf32>
    %c495_i32_33 = arith.constant 495 : i32
    %101 = tpu.dynamic_rotate %70 by %c495_i32_33 dim 1 : vector<8x512xf32>, i32 -> vector<8x512xf32>
    %102 = vector.extract_strided_slice %2 {offsets = [8, 0], sizes = [1, 512], strides = [1, 1]} : vector<9x512xf32> to vector<1x512xf32>
    %103 = vector.broadcast %102 : vector<1x512xf32> to vector<8x512xf32>
    %104 = arith.mulf %101, %103 : vector<8x512xf32>
    %105 = tpu.concatenate %76, %80, %84, %88, %70, %92, %96, %100, %104 in 0 : vector<8x512xf32>, vector<8x512xf32>, vector<8x512xf32>, vector<8x512xf32>, vector<8x512xf32>, vector<8x512xf32>, vector<8x512xf32>, vector<8x512xf32>, vector<8x512xf32> -> vector<72x512xf32>
    %106 = arith.truncf %105 : vector<72x512xf32> to vector<72x512xbf16>
    %c0_34 = arith.constant 0 : index
    %c0_35 = arith.constant 0 : index
    %107 = vector.load %arg7[%c0_34, %c0_35] : memref<8x72xbf16, #tpu.memory_space<vmem>>, vector<8x72xbf16>
    %cst_36 = arith.constant dense<0.000000e+00> : vector<8x512xf32>
    %108 = tpu.matmul %107, %106, %cst_36 {dimension_numbers = #tpu.dot_dimension_numbers<[1], [0], [0], [1], [0, 0, 1, 1], [], []>} : vector<8x72xbf16>, vector<72x512xbf16>, vector<8x512xf32> -> vector<8x512xf32>
    %109 = vector.broadcast %72 : vector<8x1xf32> to vector<8x512xf32>
    %110 = arith.addf %108, %109 : vector<8x512xf32>
    %c1_37 = arith.constant 1 : index
    %c0_38 = arith.constant 0 : index
    %c0_39 = arith.constant 0 : index
    %111 = vector.load %arg8[%c1_37, %c0_38, %c0_39] : memref<3x8x1xf32, #tpu.memory_space<vmem>>, vector<1x8x1xf32>
    %112 = vector.shape_cast %111 : vector<1x8x1xf32> to vector<8x1xf32>
    %c2_40 = arith.constant 2 : index
    %c0_41 = arith.constant 0 : index
    %c0_42 = arith.constant 0 : index
    %113 = vector.load %arg8[%c2_40, %c0_41, %c0_42] : memref<3x8x1xf32, #tpu.memory_space<vmem>>, vector<1x8x1xf32>
    %114 = vector.shape_cast %113 : vector<1x8x1xf32> to vector<8x1xf32>
    %cst_43 = arith.constant dense<0.000000e+00> : vector<8xf32>
    %115 = vector.multi_reduction <add>, %110, %cst_43 [1] : vector<8x512xf32> to vector<8xf32>
    %116 = vector.shape_cast %115 : vector<8xf32> to vector<8x1xf32>
    %cst_44 = arith.constant 5.120000e+02 : f32
    %117 = vector.broadcast %cst_44 : f32 to vector<8x1xf32>
    %118 = arith.divf %116, %117 : vector<8x1xf32>
    %119 = vector.broadcast %118 : vector<8x1xf32> to vector<8x512xf32>
    %120 = arith.subf %110, %119 : vector<8x512xf32>
    %121 = arith.mulf %120, %120 : vector<8x512xf32>
    %cst_45 = arith.constant dense<0.000000e+00> : vector<8xf32>
    %122 = vector.multi_reduction <add>, %121, %cst_45 [1] : vector<8x512xf32> to vector<8xf32>
    %123 = vector.shape_cast %122 : vector<8xf32> to vector<8x1xf32>
    %cst_46 = arith.constant 5.120000e+02 : f32
    %124 = vector.broadcast %cst_46 : f32 to vector<8x1xf32>
    %125 = arith.divf %123, %124 : vector<8x1xf32>
    %cst_47 = arith.constant 0.000000e+00 : f32
    %126 = vector.broadcast %cst_47 : f32 to vector<8x1xf32>
    %127 = arith.maximumf %125, %126 : vector<8x1xf32>
    %cst_48 = arith.constant 9.99999974E-6 : f32
    %128 = vector.broadcast %cst_48 : f32 to vector<8x1xf32>
    %129 = arith.addf %127, %128 : vector<8x1xf32>
    %130 = math.rsqrt %129 : vector<8x1xf32>
    %131 = arith.mulf %112, %130 : vector<8x1xf32>
    %132 = vector.broadcast %131 : vector<8x1xf32> to vector<8x512xf32>
    %133 = arith.mulf %120, %132 : vector<8x512xf32>
    %134 = vector.broadcast %114 : vector<8x1xf32> to vector<8x512xf32>
    %135 = arith.addf %133, %134 : vector<8x512xf32>
    %cst_49 = arith.constant 0.000000e+00 : f32
    %136 = vector.broadcast %cst_49 : f32 to vector<8x512xf32>
    %137 = arith.maximumf %135, %136 : vector<8x512xf32>
    %138 = arith.truncf %0 : vector<4x512xf32> to vector<4x512xbf16>
    %cst_50 = arith.constant dense<0.000000e+00> : vector<4x128xf32>
    %139 = tpu.matmul %138, %1, %cst_50 {dimension_numbers = #tpu.dot_dimension_numbers<[1], [0], [0], [1], [0, 0, 1, 1], [], []>} : vector<4x512xbf16>, vector<512x128xbf16>, vector<4x128xf32> -> vector<4x128xf32>
    %c0_51 = arith.constant 0 : index
    %c0_52 = arith.constant 0 : index
    %c0_53 = arith.constant 0 : index
    %140 = vector.load %arg10[%c0_51, %c0_52, %c0_53] : memref<3x8x1xf32, #tpu.memory_space<vmem>>, vector<1x8x1xf32>
    %141 = vector.shape_cast %140 : vector<1x8x1xf32> to vector<8x1xf32>
    %c9_i32 = arith.constant 9 : i32
    %142 = tpu.dynamic_rotate %139 by %c9_i32 dim 1 : vector<4x128xf32>, i32 -> vector<4x128xf32>
    %143 = vector.extract_strided_slice %3 {offsets = [0, 0], sizes = [1, 128], strides = [1, 1]} : vector<9x128xf32> to vector<1x128xf32>
    %144 = vector.broadcast %143 : vector<1x128xf32> to vector<4x128xf32>
    %145 = arith.mulf %142, %144 : vector<4x128xf32>
    %c8_i32 = arith.constant 8 : i32
    %146 = tpu.dynamic_rotate %139 by %c8_i32 dim 1 : vector<4x128xf32>, i32 -> vector<4x128xf32>
    %147 = vector.extract_strided_slice %3 {offsets = [1, 0], sizes = [1, 128], strides = [1, 1]} : vector<9x128xf32> to vector<1x128xf32>
    %148 = vector.broadcast %147 : vector<1x128xf32> to vector<4x128xf32>
    %149 = arith.mulf %146, %148 : vector<4x128xf32>
    %c7_i32 = arith.constant 7 : i32
    %150 = tpu.dynamic_rotate %139 by %c7_i32 dim 1 : vector<4x128xf32>, i32 -> vector<4x128xf32>
    %151 = vector.extract_strided_slice %3 {offsets = [2, 0], sizes = [1, 128], strides = [1, 1]} : vector<9x128xf32> to vector<1x128xf32>
    %152 = vector.broadcast %151 : vector<1x128xf32> to vector<4x128xf32>
    %153 = arith.mulf %150, %152 : vector<4x128xf32>
    %c1_i32_54 = arith.constant 1 : i32
    %154 = tpu.dynamic_rotate %139 by %c1_i32_54 dim 1 : vector<4x128xf32>, i32 -> vector<4x128xf32>
    %155 = vector.extract_strided_slice %3 {offsets = [3, 0], sizes = [1, 128], strides = [1, 1]} : vector<9x128xf32> to vector<1x128xf32>
    %156 = vector.broadcast %155 : vector<1x128xf32> to vector<4x128xf32>
    %157 = arith.mulf %154, %156 : vector<4x128xf32>
    %c127_i32 = arith.constant 127 : i32
    %158 = tpu.dynamic_rotate %139 by %c127_i32 dim 1 : vector<4x128xf32>, i32 -> vector<4x128xf32>
    %159 = vector.extract_strided_slice %3 {offsets = [5, 0], sizes = [1, 128], strides = [1, 1]} : vector<9x128xf32> to vector<1x128xf32>
    %160 = vector.broadcast %159 : vector<1x128xf32> to vector<4x128xf32>
    %161 = arith.mulf %158, %160 : vector<4x128xf32>
    %c121_i32 = arith.constant 121 : i32
    %162 = tpu.dynamic_rotate %139 by %c121_i32 dim 1 : vector<4x128xf32>, i32 -> vector<4x128xf32>
    %163 = vector.extract_strided_slice %3 {offsets = [6, 0], sizes = [1, 128], strides = [1, 1]} : vector<9x128xf32> to vector<1x128xf32>
    %164 = vector.broadcast %163 : vector<1x128xf32> to vector<4x128xf32>
    %165 = arith.mulf %162, %164 : vector<4x128xf32>
    %c120_i32 = arith.constant 120 : i32
    %166 = tpu.dynamic_rotate %139 by %c120_i32 dim 1 : vector<4x128xf32>, i32 -> vector<4x128xf32>
    %167 = vector.extract_strided_slice %3 {offsets = [7, 0], sizes = [1, 128], strides = [1, 1]} : vector<9x128xf32> to vector<1x128xf32>
    %168 = vector.broadcast %167 : vector<1x128xf32> to vector<4x128xf32>
    %169 = arith.mulf %166, %168 : vector<4x128xf32>
    %c119_i32 = arith.constant 119 : i32
    %170 = tpu.dynamic_rotate %139 by %c119_i32 dim 1 : vector<4x128xf32>, i32 -> vector<4x128xf32>
    %171 = vector.extract_strided_slice %3 {offsets = [8, 0], sizes = [1, 128], strides = [1, 1]} : vector<9x128xf32> to vector<1x128xf32>
    %172 = vector.broadcast %171 : vector<1x128xf32> to vector<4x128xf32>
    %173 = arith.mulf %170, %172 : vector<4x128xf32>
    %174 = tpu.concatenate %145, %149, %153, %157, %139, %161, %165, %169, %173 in 0 : vector<4x128xf32>, vector<4x128xf32>, vector<4x128xf32>, vector<4x128xf32>, vector<4x128xf32>, vector<4x128xf32>, vector<4x128xf32>, vector<4x128xf32>, vector<4x128xf32> -> vector<36x128xf32>
    %175 = arith.truncf %174 : vector<36x128xf32> to vector<36x128xbf16>
    %c0_55 = arith.constant 0 : index
    %c0_56 = arith.constant 0 : index
    %176 = vector.load %arg9[%c0_55, %c0_56] : memref<8x36xbf16, #tpu.memory_space<vmem>>, vector<8x36xbf16>
    %cst_57 = arith.constant dense<0.000000e+00> : vector<8x128xf32>
    %177 = tpu.matmul %176, %175, %cst_57 {dimension_numbers = #tpu.dot_dimension_numbers<[1], [0], [0], [1], [0, 0, 1, 1], [], []>} : vector<8x36xbf16>, vector<36x128xbf16>, vector<8x128xf32> -> vector<8x128xf32>
    %178 = vector.broadcast %141 : vector<8x1xf32> to vector<8x128xf32>
    %179 = arith.addf %177, %178 : vector<8x128xf32>
    %c1_58 = arith.constant 1 : index
    %c0_59 = arith.constant 0 : index
    %c0_60 = arith.constant 0 : index
    %180 = vector.load %arg10[%c1_58, %c0_59, %c0_60] : memref<3x8x1xf32, #tpu.memory_space<vmem>>, vector<1x8x1xf32>
    %181 = vector.shape_cast %180 : vector<1x8x1xf32> to vector<8x1xf32>
    %c2_61 = arith.constant 2 : index
    %c0_62 = arith.constant 0 : index
    %c0_63 = arith.constant 0 : index
    %182 = vector.load %arg10[%c2_61, %c0_62, %c0_63] : memref<3x8x1xf32, #tpu.memory_space<vmem>>, vector<1x8x1xf32>
    %183 = vector.shape_cast %182 : vector<1x8x1xf32> to vector<8x1xf32>
    %cst_64 = arith.constant dense<0.000000e+00> : vector<8xf32>
    %184 = vector.multi_reduction <add>, %179, %cst_64 [1] : vector<8x128xf32> to vector<8xf32>
    %185 = vector.shape_cast %184 : vector<8xf32> to vector<8x1xf32>
    %cst_65 = arith.constant 1.280000e+02 : f32
    %186 = vector.broadcast %cst_65 : f32 to vector<8x1xf32>
    %187 = arith.divf %185, %186 : vector<8x1xf32>
    %188 = vector.broadcast %187 : vector<8x1xf32> to vector<8x128xf32>
    %189 = arith.subf %179, %188 : vector<8x128xf32>
    %190 = arith.mulf %189, %189 : vector<8x128xf32>
    %cst_66 = arith.constant dense<0.000000e+00> : vector<8xf32>
    %191 = vector.multi_reduction <add>, %190, %cst_66 [1] : vector<8x128xf32> to vector<8xf32>
    %192 = vector.shape_cast %191 : vector<8xf32> to vector<8x1xf32>
    %cst_67 = arith.constant 1.280000e+02 : f32
    %193 = vector.broadcast %cst_67 : f32 to vector<8x1xf32>
    %194 = arith.divf %192, %193 : vector<8x1xf32>
    %cst_68 = arith.constant 0.000000e+00 : f32
    %195 = vector.broadcast %cst_68 : f32 to vector<8x1xf32>
    %196 = arith.maximumf %194, %195 : vector<8x1xf32>
    %cst_69 = arith.constant 9.99999974E-6 : f32
    %197 = vector.broadcast %cst_69 : f32 to vector<8x1xf32>
    %198 = arith.addf %196, %197 : vector<8x1xf32>
    %199 = math.rsqrt %198 : vector<8x1xf32>
    %200 = arith.mulf %181, %199 : vector<8x1xf32>
    %201 = vector.broadcast %200 : vector<8x1xf32> to vector<8x128xf32>
    %202 = arith.mulf %189, %201 : vector<8x128xf32>
    %203 = vector.broadcast %183 : vector<8x1xf32> to vector<8x128xf32>
    %204 = arith.addf %202, %203 : vector<8x128xf32>
    %cst_70 = arith.constant 0.000000e+00 : f32
    %205 = vector.broadcast %cst_70 : f32 to vector<8x128xf32>
    %206 = arith.maximumf %204, %205 : vector<8x128xf32>
    %c0_71 = arith.constant 0 : index
    %c0_72 = arith.constant 0 : index
    %c0_73 = arith.constant 0 : index
    %207 = vector.load %arg12[%c0_71, %c0_72, %c0_73] : memref<3x8x1xf32, #tpu.memory_space<vmem>>, vector<1x8x1xf32>
    %208 = vector.shape_cast %207 : vector<1x8x1xf32> to vector<8x1xf32>
    %c9_i32_74 = arith.constant 9 : i32
    %209 = tpu.dynamic_rotate %206 by %c9_i32_74 dim 1 : vector<8x128xf32>, i32 -> vector<8x128xf32>
    %210 = vector.extract_strided_slice %3 {offsets = [0, 0], sizes = [1, 128], strides = [1, 1]} : vector<9x128xf32> to vector<1x128xf32>
    %211 = vector.broadcast %210 : vector<1x128xf32> to vector<8x128xf32>
    %212 = arith.mulf %209, %211 : vector<8x128xf32>
    %c8_i32_75 = arith.constant 8 : i32
    %213 = tpu.dynamic_rotate %206 by %c8_i32_75 dim 1 : vector<8x128xf32>, i32 -> vector<8x128xf32>
    %214 = vector.extract_strided_slice %3 {offsets = [1, 0], sizes = [1, 128], strides = [1, 1]} : vector<9x128xf32> to vector<1x128xf32>
    %215 = vector.broadcast %214 : vector<1x128xf32> to vector<8x128xf32>
    %216 = arith.mulf %213, %215 : vector<8x128xf32>
    %c7_i32_76 = arith.constant 7 : i32
    %217 = tpu.dynamic_rotate %206 by %c7_i32_76 dim 1 : vector<8x128xf32>, i32 -> vector<8x128xf32>
    %218 = vector.extract_strided_slice %3 {offsets = [2, 0], sizes = [1, 128], strides = [1, 1]} : vector<9x128xf32> to vector<1x128xf32>
    %219 = vector.broadcast %218 : vector<1x128xf32> to vector<8x128xf32>
    %220 = arith.mulf %217, %219 : vector<8x128xf32>
    %c1_i32_77 = arith.constant 1 : i32
    %221 = tpu.dynamic_rotate %206 by %c1_i32_77 dim 1 : vector<8x128xf32>, i32 -> vector<8x128xf32>
    %222 = vector.extract_strided_slice %3 {offsets = [3, 0], sizes = [1, 128], strides = [1, 1]} : vector<9x128xf32> to vector<1x128xf32>
    %223 = vector.broadcast %222 : vector<1x128xf32> to vector<8x128xf32>
    %224 = arith.mulf %221, %223 : vector<8x128xf32>
    %c127_i32_78 = arith.constant 127 : i32
    %225 = tpu.dynamic_rotate %206 by %c127_i32_78 dim 1 : vector<8x128xf32>, i32 -> vector<8x128xf32>
    %226 = vector.extract_strided_slice %3 {offsets = [5, 0], sizes = [1, 128], strides = [1, 1]} : vector<9x128xf32> to vector<1x128xf32>
    %227 = vector.broadcast %226 : vector<1x128xf32> to vector<8x128xf32>
    %228 = arith.mulf %225, %227 : vector<8x128xf32>
    %c121_i32_79 = arith.constant 121 : i32
    %229 = tpu.dynamic_rotate %206 by %c121_i32_79 dim 1 : vector<8x128xf32>, i32 -> vector<8x128xf32>
    %230 = vector.extract_strided_slice %3 {offsets = [6, 0], sizes = [1, 128], strides = [1, 1]} : vector<9x128xf32> to vector<1x128xf32>
    %231 = vector.broadcast %230 : vector<1x128xf32> to vector<8x128xf32>
    %232 = arith.mulf %229, %231 : vector<8x128xf32>
    %c120_i32_80 = arith.constant 120 : i32
    %233 = tpu.dynamic_rotate %206 by %c120_i32_80 dim 1 : vector<8x128xf32>, i32 -> vector<8x128xf32>
    %234 = vector.extract_strided_slice %3 {offsets = [7, 0], sizes = [1, 128], strides = [1, 1]} : vector<9x128xf32> to vector<1x128xf32>
    %235 = vector.broadcast %234 : vector<1x128xf32> to vector<8x128xf32>
    %236 = arith.mulf %233, %235 : vector<8x128xf32>
    %c119_i32_81 = arith.constant 119 : i32
    %237 = tpu.dynamic_rotate %206 by %c119_i32_81 dim 1 : vector<8x128xf32>, i32 -> vector<8x128xf32>
    %238 = vector.extract_strided_slice %3 {offsets = [8, 0], sizes = [1, 128], strides = [1, 1]} : vector<9x128xf32> to vector<1x128xf32>
    %239 = vector.broadcast %238 : vector<1x128xf32> to vector<8x128xf32>
    %240 = arith.mulf %237, %239 : vector<8x128xf32>
    %241 = tpu.concatenate %212, %216, %220, %224, %206, %228, %232, %236, %240 in 0 : vector<8x128xf32>, vector<8x128xf32>, vector<8x128xf32>, vector<8x128xf32>, vector<8x128xf32>, vector<8x128xf32>, vector<8x128xf32>, vector<8x128xf32>, vector<8x128xf32> -> vector<72x128xf32>
    %242 = arith.truncf %241 : vector<72x128xf32> to vector<72x128xbf16>
    %c0_82 = arith.constant 0 : index
    %c0_83 = arith.constant 0 : index
    %243 = vector.load %arg11[%c0_82, %c0_83] : memref<8x72xbf16, #tpu.memory_space<vmem>>, vector<8x72xbf16>
    %cst_84 = arith.constant dense<0.000000e+00> : vector<8x128xf32>
    %244 = tpu.matmul %243, %242, %cst_84 {dimension_numbers = #tpu.dot_dimension_numbers<[1], [0], [0], [1], [0, 0, 1, 1], [], []>} : vector<8x72xbf16>, vector<72x128xbf16>, vector<8x128xf32> -> vector<8x128xf32>
    %245 = vector.broadcast %208 : vector<8x1xf32> to vector<8x128xf32>
    %246 = arith.addf %244, %245 : vector<8x128xf32>
    %c1_85 = arith.constant 1 : index
    %c0_86 = arith.constant 0 : index
    %c0_87 = arith.constant 0 : index
    %247 = vector.load %arg12[%c1_85, %c0_86, %c0_87] : memref<3x8x1xf32, #tpu.memory_space<vmem>>, vector<1x8x1xf32>
    %248 = vector.shape_cast %247 : vector<1x8x1xf32> to vector<8x1xf32>
    %c2_88 = arith.constant 2 : index
    %c0_89 = arith.constant 0 : index
    %c0_90 = arith.constant 0 : index
    %249 = vector.load %arg12[%c2_88, %c0_89, %c0_90] : memref<3x8x1xf32, #tpu.memory_space<vmem>>, vector<1x8x1xf32>
    %250 = vector.shape_cast %249 : vector<1x8x1xf32> to vector<8x1xf32>
    %cst_91 = arith.constant dense<0.000000e+00> : vector<8xf32>
    %251 = vector.multi_reduction <add>, %246, %cst_91 [1] : vector<8x128xf32> to vector<8xf32>
    %252 = vector.shape_cast %251 : vector<8xf32> to vector<8x1xf32>
    %cst_92 = arith.constant 1.280000e+02 : f32
    %253 = vector.broadcast %cst_92 : f32 to vector<8x1xf32>
    %254 = arith.divf %252, %253 : vector<8x1xf32>
    %255 = vector.broadcast %254 : vector<8x1xf32> to vector<8x128xf32>
    %256 = arith.subf %246, %255 : vector<8x128xf32>
    %257 = arith.mulf %256, %256 : vector<8x128xf32>
    %cst_93 = arith.constant dense<0.000000e+00> : vector<8xf32>
    %258 = vector.multi_reduction <add>, %257, %cst_93 [1] : vector<8x128xf32> to vector<8xf32>
    %259 = vector.shape_cast %258 : vector<8xf32> to vector<8x1xf32>
    %cst_94 = arith.constant 1.280000e+02 : f32
    %260 = vector.broadcast %cst_94 : f32 to vector<8x1xf32>
    %261 = arith.divf %259, %260 : vector<8x1xf32>
    %cst_95 = arith.constant 0.000000e+00 : f32
    %262 = vector.broadcast %cst_95 : f32 to vector<8x1xf32>
    %263 = arith.maximumf %261, %262 : vector<8x1xf32>
    %cst_96 = arith.constant 9.99999974E-6 : f32
    %264 = vector.broadcast %cst_96 : f32 to vector<8x1xf32>
    %265 = arith.addf %263, %264 : vector<8x1xf32>
    %266 = math.rsqrt %265 : vector<8x1xf32>
    %267 = arith.mulf %248, %266 : vector<8x1xf32>
    %268 = vector.broadcast %267 : vector<8x1xf32> to vector<8x128xf32>
    %269 = arith.mulf %256, %268 : vector<8x128xf32>
    %270 = vector.broadcast %250 : vector<8x1xf32> to vector<8x128xf32>
    %271 = arith.addf %269, %270 : vector<8x128xf32>
    %cst_97 = arith.constant 0.000000e+00 : f32
    %272 = vector.broadcast %cst_97 : f32 to vector<8x128xf32>
    %273 = arith.maximumf %271, %272 : vector<8x128xf32>
    %274 = arith.truncf %273 : vector<8x128xf32> to vector<8x128xbf16>
    %cst_98 = arith.constant dense<0.000000e+00> : vector<8x512xf32>
    %275 = tpu.matmul %274, %1, %cst_98 {dimension_numbers = #tpu.dot_dimension_numbers<[1], [1], [0], [0], [0, 0, 1, 0], [], []>} : vector<8x128xbf16>, vector<512x128xbf16>, vector<8x512xf32> -> vector<8x512xf32>
    %cst_99 = arith.constant 4.000000e+00 : f32
    %276 = vector.broadcast %cst_99 : f32 to vector<8x512xf32>
    %277 = arith.mulf %275, %276 : vector<8x512xf32>
    %278 = arith.mulf %277, %137 : vector<8x512xf32>
    %279 = arith.addf %278, %277 : vector<8x512xf32>
    %c0_100 = arith.constant 0 : index
    %c0_101 = arith.constant 0 : index
    %280 = vector.load %arg13[%c0_100, %c0_101] : memref<8x512xf32, #tpu.memory_space<vmem>>, vector<8x512xf32>
    tpu.vector_store %arg13[%c0_100, %c0_101], %279 {strides = array<i32>} : memref<8x512xf32, #tpu.memory_space<vmem>>, vector<8x512xf32>,
    return
  }
  func.func @transform_0(%arg0: i32) -> (i32, i32) {
    %c0_i32 = arith.constant 0 : i32
    %c0_i32_0 = arith.constant 0 : i32
    %c0_i32_1 = arith.constant 0 : i32
    return %c0_i32, %c0_i32_0 : i32, i32
  }
  func.func @transform_1(%arg0: i32) -> (i32, i32) {
    %c0_i32 = arith.constant 0 : i32
    %c0_i32_0 = arith.constant 0 : i32
    %c0_i32_1 = arith.constant 0 : i32
    return %c0_i32, %c0_i32_0 : i32, i32
  }
  func.func @transform_2(%arg0: i32) -> (i32, i32) {
    %c0_i32 = arith.constant 0 : i32
    %c0_i32_0 = arith.constant 0 : i32
    %c0_i32_1 = arith.constant 0 : i32
    return %c0_i32, %c0_i32_0 : i32, i32
  }
  func.func @transform_3(%arg0: i32) -> (i32, i32) {
    %c0_i32 = arith.constant 0 : i32
    %c0_i32_0 = arith.constant 0 : i32
    %c0_i32_1 = arith.constant 0 : i32
    return %c0_i32, %c0_i32_0 : i32, i32
  }
  func.func @transform_4(%arg0: i32) -> (i32, i32) {
    %c0_i32 = arith.constant 0 : i32
    %c0_i32_0 = arith.constant 0 : i32
    %c0_i32_1 = arith.constant 0 : i32
    return %c0_i32, %c0_i32_0 : i32, i32
  }
  func.func @transform_5(%arg0: i32) -> (i32, i32, i32) {
    %c0_i32 = arith.constant 0 : i32
    %c0_i32_0 = arith.constant 0 : i32
    %c0_i32_1 = arith.constant 0 : i32
    %c0_i32_2 = arith.constant 0 : i32
    return %c0_i32, %c0_i32_0, %c0_i32_1 : i32, i32, i32
  }
  func.func @transform_6(%arg0: i32) -> (i32, i32) {
    %c0_i32 = arith.constant 0 : i32
    %c0_i32_0 = arith.constant 0 : i32
    %c0_i32_1 = arith.constant 0 : i32
    return %c0_i32, %c0_i32_0 : i32, i32
  }
  func.func @transform_7(%arg0: i32) -> (i32, i32, i32) {
    %c0_i32 = arith.constant 0 : i32
    %c0_i32_0 = arith.constant 0 : i32
    %c0_i32_1 = arith.constant 0 : i32
    %c0_i32_2 = arith.constant 0 : i32
    return %c0_i32, %c0_i32_0, %c0_i32_1 : i32, i32, i32
  }
  func.func @transform_8(%arg0: i32) -> (i32, i32) {
    %c0_i32 = arith.constant 0 : i32
    %c0_i32_0 = arith.constant 0 : i32
    %c0_i32_1 = arith.constant 0 : i32
    return %c0_i32, %c0_i32_0 : i32, i32
  }
  func.func @transform_9(%arg0: i32) -> (i32, i32, i32) {
    %c0_i32 = arith.constant 0 : i32
    %c0_i32_0 = arith.constant 0 : i32
    %c0_i32_1 = arith.constant 0 : i32
    %c0_i32_2 = arith.constant 0 : i32
    return %c0_i32, %c0_i32_0, %c0_i32_1 : i32, i32, i32
  }
  func.func @transform_10(%arg0: i32) -> (i32, i32) {
    %c0_i32 = arith.constant 0 : i32
    %c0_i32_0 = arith.constant 0 : i32
    %c0_i32_1 = arith.constant 0 : i32
    return %c0_i32, %c0_i32_0 : i32, i32
  }
  func.func @transform_11(%arg0: i32) -> (i32, i32, i32) {
    %c0_i32 = arith.constant 0 : i32
    %c0_i32_0 = arith.constant 0 : i32
    %c0_i32_1 = arith.constant 0 : i32
    %c0_i32_2 = arith.constant 0 : i32
    return %c0_i32, %c0_i32_0, %c0_i32_1 : i32, i32, i32
  }
  func.func @transform_12(%arg0: i32) -> (i32, i32) {
    %c0_i32 = arith.constant 0 : i32
    %c0_i32_0 = arith.constant 0 : i32
    %c0_i32_1 = arith.constant 0 : i32
    return %c0_i32, %c0_i32_0 : i32, i32
  }
}

</mosaic_0001>

<bundles_post_ra>
// kernel: squeeze_attention_block.1
= control target key start
LH: loop header
LB: loop body
LE: loop exit
PB: predicated region body
PF: predicated region fallthrough
CT: control target
= control target key end

     0   :  { %s1652_s25 = smov 17   ;;  %s1654_s26 = smov 15   ;;  %v140_v53 = vlaneseq  ;;  %vm438_vm8 = vcmask 1043456   ;;  %vm477_vm9 = vcmask 1041408   ;;  %vm473_vm10 = vcmask 293888   ;;  %s2663_s0 = inlined_call_operand.vmem [shape: f32[4,512], index: 0, kind: input, shape index: {}]   ;;  %s2664_s2 = inlined_call_operand.vmem [shape: f32[9,512], index: 2, kind: input, shape index: {}]   ;;  %s2665_s5 = inlined_call_operand.vmem [shape: f32[3,8,1], index: 5, kind: input, shape index: {}]   ;;  %s2666_s4 = inlined_call_operand.vmem [shape: bf16[8,36], index: 4, kind: input, shape index: {}]   ;;  %s2667_s1 = inlined_call_operand.vmem [shape: bf16[512,128], index: 1, kind: input, shape index: {}]   ;;  %s2668_s6 = inlined_call_operand.vmem [shape: bf16[8,72], index: 6, kind: input, shape index: {}]   ;;  %s2669_s3 = inlined_call_operand.vmem [shape: f32[9,128], index: 3, kind: input, shape index: {}]   ;;  %s2670_s9 = inlined_call_operand.vmem [shape: f32[3,8,1], index: 9, kind: input, shape index: {}]   ;;  %s2671_s8 = inlined_call_operand.vmem [shape: bf16[8,36], index: 8, kind: input, shape index: {}]   ;;  %s2672_s11 = inlined_call_operand.vmem [shape: f32[3,8,1], index: 11, kind: input, shape index: {}]   ;;  %s2673_s7 = inlined_call_operand.vmem [shape: f32[3,8,1], index: 7, kind: input, shape index: {}]   ;;  %s2674_s10 = inlined_call_operand.vmem [shape: bf16[8,72], index: 10, kind: input, shape index: {}]   ;;  %s2675_s12 = inlined_call_operand.vmem [shape: f32[8,512], index: 12, kind: output, shape index: {}]  }
   0x1   :  { %v1737_v0 = vld [vmem:[%s2663_s0] sm:$0xff]  ;;  %v1742_v1 = vld [vmem:[%s2663_s0 + $0x8] sm:$0xff]  ;;  %s1653_s0 = smov 16   ;;  %s1655_s27 = smov 1   ;;  %vm763_vm15 = vcmask 588800  }
   0x2   :  { %121 = vst [vmem:[#allocation1] ss:$2 sm:$0xff] %v1737_v0  ;;  %s1656_s28 = smov 127   ;;  %s1657_s29 = smov 113   ;;  %v1843_v55 = vand.u32 127, %v140_v53  ;;  %v1848_v56 = vld [vmem:[%s2664_s2 + $0x8] sm:$0xff] }
   0x3   :  { %123 = vst [vmem:[#allocation1 + $0x10] ss:$2 sm:$0xff] %v1742_v1  ;;  %s1658_s30 = smov 112   ;;  %s1659_s13 = smov 111   ;;  %v180_v60 = vperm.slane %v1848_v56, 1  ;;  %v340_v62 = vperm.slane %v1848_v56, 7 }
   0x4   :  { %vm174_vm0 = vcmp.lt.s32.totalorder %v1843_v55, 16  ;;  %vm334_vm1 = vcmp.lt.s32.totalorder %v1843_v55, 112  ;;  %vm238_vm2 = vcmp.lt.s32.totalorder %v1843_v55, 1  ;;  %vm142_vm3 = vcmp.lt.s32.totalorder %v1843_v55, 17  ;;  %s1667_s14 = smov 9  }
   0x5   :  { %v148_v63 = vperm.slane %v1848_v56, 0  ;;  %vm270_vm4 = vcmp.lt.s32.totalorder %v1843_v55, 127  ;;  %vm302_vm5 = vcmp.lt.s32.totalorder %v1843_v55, 113  ;;  %vm206_vm6 = vcmp.lt.s32.totalorder %v1843_v55, 15 }
   0x6   :  { %vm366_vm7 = vcmp.lt.s32.totalorder %v1843_v55, 111  ;;  %v1598_v55 = vld [vmem:[%s2667_s1 + $0x78] sm:$0xff] }
   0x9   :  { %v124_v2 = vld.sshfl [vmem:[#allocation1] sm:$0xff pattern:$0x75316420]  ;;  %v125_v3 = vld.sshfl [vmem:[#allocation1 + $0x8] sm:$0xff pattern:$0x75316420] }
   0xa   :  { %132 = vrot.lane.b32.xlu0 %v124_v2, %s1652_s25  ;;  %155 = vst [vmem:[#allocation1] ss:$2 sm:$0xff] %v1737_v0  ;;  %134 = vrot.lane.b32.xlu1 %v125_v3, %s1652_s25  ;;  %v1749_v4 = vld.sshfl [vmem:[#allocation1 + $0x10] sm:$0xff pattern:$0x75316420]  ;;  %v276_v2 = vperm.slane %v1848_v56, 5 }
   0xb   :  { %v1751_v5 = vld.sshfl [vmem:[#allocation1 + $0x18] sm:$0xff pattern:$0x75316420] }
   0xc   :  { %157 = vst [vmem:[#allocation1 + $0x10] ss:$2 sm:$0xff] %v1742_v1 }
  0x11   :  { %v158_v6 = vld.sshfl [vmem:[#allocation1] sm:$0xff pattern:$0x75316420]  ;;  %v159_v7 = vld.sshfl [vmem:[#allocation1 + $0x8] sm:$0xff pattern:$0x75316420] }
  0x12   :  { %166 = vrot.lane.b32.xlu2 %v158_v6, %s1653_s0  ;;  %168 = vrot.lane.b32.xlu0 %v159_v7, %s1653_s0  ;;  %187 = vst [vmem:[#allocation1] ss:$2 sm:$0xff] %v1737_v0  ;;  %v1889_v7 = vld [vmem:[%s2664_s2 + $0x18] sm:$0xff] }
  0x13   :  { %v160_v8 = vld.sshfl [vmem:[#allocation1 + $0x10] sm:$0xff pattern:$0x75316420]  ;;  %v1757_v9 = vld.sshfl [vmem:[#allocation1 + $0x18] sm:$0xff pattern:$0x75316420] }
  0x14   :  { %189 = vst [vmem:[#allocation1 + $0x10] ss:$2 sm:$0xff] %v1742_v1 }
  0x19   :  { %v190_v10 = vld.sshfl [vmem:[#allocation1] sm:$0xff pattern:$0x75316420]  ;;  %v191_v11 = vld.sshfl [vmem:[#allocation1 + $0x8] sm:$0xff pattern:$0x75316420] }
  0x1a   :  { %198 = vrot.lane.b32.xlu2 %v190_v10, %s1654_s26  ;;  %219 = vst [vmem:[#allocation1] ss:$2 sm:$0xff] %v1737_v0  ;;  %200 = vrot.lane.b32.xlu0 %v191_v11, %s1654_s26  ;;  %v1900_v11 = vld [vmem:[%s2664_s2 + $0x28] ss:$0 sm:$0xff] }
  0x1b   :  { %v192_v12 = vld.sshfl [vmem:[#allocation1 + $0x10] sm:$0xff pattern:$0x75316420]  ;;  %v193_v13 = vld.sshfl [vmem:[#allocation1 + $0x18] sm:$0xff pattern:$0x75316420] }
  0x1c   :  { %221 = vst [vmem:[#allocation1 + $0x10] ss:$2 sm:$0xff] %v1742_v1 }
  0x21   :  { %v223_v14 = vld.sshfl [vmem:[#allocation1 + $0x8] sm:$0xff pattern:$0x75316420]  ;;  %v222_v15 = vld.sshfl [vmem:[#allocation1] sm:$0xff pattern:$0x75316420] }
  0x22   :  { %232 = vrot.lane.b32.xlu2 %v223_v14, %s1655_s27  ;;  %230 = vrot.lane.b32.xlu1 %v222_v15, %s1655_s27  ;;  %251 = vst [vmem:[#allocation1] ss:$2 sm:$0xff] %v1737_v0 }
  0x23   :  { %v224_v16 = vld.sshfl [vmem:[#allocation1 + $0x10] sm:$0xff pattern:$0x75316420]  ;;  %v225_v17 = vld.sshfl [vmem:[#allocation1 + $0x18] sm:$0xff pattern:$0x75316420] }
  0x24   :  { %253 = vst [vmem:[#allocation1 + $0x10] ss:$2 sm:$0xff] %v1742_v1 }
  0x29   :  { %v255_v18 = vld.sshfl [vmem:[#allocation1 + $0x8] sm:$0xff pattern:$0x75316420]  ;;  %v254_v19 = vld.sshfl [vmem:[#allocation1] sm:$0xff pattern:$0x75316420] }
  0x2a   :  { %264 = vrot.lane.b32.xlu1 %v255_v18, %s1656_s28  ;;  %283 = vst [vmem:[#allocation1] ss:$2 sm:$0xff] %v1737_v0 }
  0x2b   :  { %v257_v20 = vld.sshfl [vmem:[#allocation1 + $0x18] sm:$0xff pattern:$0x75316420]  ;;  %v256_v21 = vld.sshfl [vmem:[#allocation1 + $0x10] sm:$0xff pattern:$0x75316420] }
  0x2c   :  { %268 = vrot.lane.b32.xlu2 %v257_v20, %s1656_s28  ;;  %285 = vst [vmem:[#allocation1 + $0x10] ss:$2 sm:$0xff] %v1742_v1 }
  0x31   :  { %v287_v22 = vld.sshfl [vmem:[#allocation1 + $0x8] sm:$0xff pattern:$0x75316420]  ;;  %v286_v23 = vld.sshfl [vmem:[#allocation1] sm:$0xff pattern:$0x75316420] }
  0x32   :  { %266 = vrot.lane.b32.xlu1 %v256_v21, %s1656_s28  ;;  %296 = vrot.lane.b32.xlu0 %v287_v22, %s1657_s29  ;;  %315 = vst [vmem:[#allocation1] ss:$2 sm:$0xff] %v1737_v0  ;;  %v278_v22 = vperm.slane %v1889_v7, 5 }
  0x33   :  { %v288_v24 = vld.sshfl [vmem:[#allocation1 + $0x10] sm:$0xff pattern:$0x75316420]  ;;  %v289_v25 = vld.sshfl [vmem:[#allocation1 + $0x18] sm:$0xff pattern:$0x75316420] }
  0x34   :  { %262 = vrot.lane.b32.xlu2 %v254_v19, %s1656_s28  ;;  %317 = vst [vmem:[#allocation1 + $0x10] ss:$2 sm:$0xff] %v1742_v1 }
  0x39   :  { %v319_v26 = vld.sshfl [vmem:[#allocation1 + $0x8] sm:$0xff pattern:$0x75316420]  ;;  %v318_v27 = vld.sshfl [vmem:[#allocation1] sm:$0xff pattern:$0x75316420] }
  0x3a   :  { %298 = vrot.lane.b32.xlu1 %v288_v24, %s1657_s29  ;;  %347 = vst [vmem:[#allocation1] ss:$2 sm:$0xff] %v1737_v0 }
  0x3b   :  { %v321_v28 = vld.sshfl [vmem:[#allocation1 + $0x18] sm:$0xff pattern:$0x75316420]  ;;  %v320_v29 = vld.sshfl [vmem:[#allocation1 + $0x10] sm:$0xff pattern:$0x75316420] }
  0x3c   :  { %332 = vrot.lane.b32.xlu0 %v321_v28, %s1658_s30  ;;  %328 = vrot.lane.b32.xlu2 %v319_v26, %s1658_s30  ;;  %349 = vst [vmem:[#allocation1 + $0x10] ss:$2 sm:$0xff] %v1742_v1 }
  0x41   :  { %v351_v30 = vld.sshfl [vmem:[#allocation1 + $0x8] sm:$0xff pattern:$0x75316420]  ;;  %v350_v31 = vld.sshfl [vmem:[#allocation1] sm:$0xff pattern:$0x75316420] }
  0x42   :  { %326 = vrot.lane.b32.xlu1 %v318_v27, %s1658_s30  ;;  %403 = vst [vmem:[#allocation1] ss:$2 sm:$0xff] %v1737_v0 }
  0x43   :  { %v352_v32 = vld.sshfl [vmem:[#allocation1 + $0x10] sm:$0xff pattern:$0x75316420]  ;;  %v353_v33 = vld.sshfl [vmem:[#allocation1 + $0x18] sm:$0xff pattern:$0x75316420] }
  0x44   :  { %330 = vrot.lane.b32.xlu2 %v320_v29, %s1658_s30  ;;  %360 = vrot.lane.b32.xlu0 %v351_v30, %s1659_s13  ;;  %405 = vst [vmem:[#allocation1 + $0x10] ss:$2 sm:$0xff] %v1742_v1 }
  0x49   :  { %v1811_v38 = vld.sshfl [vmem:[#allocation1 + $0x8] sm:$0xff pattern:$0x75316420]  ;;  %v1813_v39 = vld.sshfl [vmem:[#allocation1] sm:$0xff pattern:$0x75316420] }
  0x4a   :  { %294 = vrot.lane.b32.xlu1 %v286_v23, %s1657_s29  ;;  %890 = vst [vmem:[#allocation1] ss:$2 sm:$0xff] %v1737_v0 }
  0x4b   :  { %v1818_v41 = vld.sshfl [vmem:[#allocation1 + $0x10] sm:$0xff pattern:$0x75316420]  ;;  %v1820_v42 = vld.sshfl [vmem:[#allocation1 + $0x18] sm:$0xff pattern:$0x75316420] }
  0x4c   :  { %170 = vrot.lane.b32.xlu2 %v160_v8, %s1653_s0  ;;  %362 = vrot.lane.b32.xlu0 %v352_v32, %s1659_s13  ;;  %892 = vst [vmem:[#allocation1 + $0x10] ss:$2 sm:$0xff] %v1742_v1  ;;  %v244_v1 = vperm.slane %v1848_v56, 3 }
  0x52   :  { %364 = vrot.lane.b32.xlu1 %v353_v33, %s1659_s13 }
  0x54   :  { %136 = vrot.lane.b32.xlu2 %v1749_v4, %s1652_s25  ;;  %300 = vrot.lane.b32.xlu0 %v289_v25, %s1657_s29 }
  0x5a   :  { %358 = vrot.lane.b32.xlu1 %v350_v31, %s1659_s13 }
  0x5c   :  { %236 = vrot.lane.b32.xlu2 %v225_v17, %s1655_s27  ;;  %234 = vrot.lane.b32.xlu0 %v224_v16, %s1655_s27  ;;  %v1916_v16 = vld [vmem:[%s2664_s2] sm:$0xff]  ;;  %v1921_v17 = vld [vmem:[%s2664_s2 + $0x10] sm:$0xff] }
  0x5d   :  { %v275_v29 = vperm.slane %v1916_v16, 5  ;;  %v277_v30 = vperm.slane %v1921_v17, 5 }
  0x62   :  { %202 = vrot.lane.b32.xlu1 %v192_v12, %s1654_s26  ;;  %v212_v12 = vperm.slane %v1848_v56, 2 }
  0x64   :  { %172 = vrot.lane.b32.xlu0 %v1757_v9, %s1653_s0  ;;  %v308_v9 = vperm.slane %v1848_v56, 6  ;;  %v2427_v56 = vld [vmem:[%s2667_s1 + $0xd8] sm:$0xff] }
  0x6a   :  { %204 = vrot.lane.b32.xlu1 %v193_v13, %s1654_s26 }
  0x6c   :  { %138 = vrot.lane.b32.xlu0 %v1751_v5, %s1652_s25  ;;  %v1803_v34 = vpop.permute.xlu2 %166 }
  0x74   :  { %v1805_v35 = vpop.permute.xlu2 %198 }
  0x7c   :  { %v1807_v36 = vpop.permute.xlu0 %132  ;;  %v1809_v37 = vpop.permute.xlu1 %134 }
  0x7d   :  { %v1816_v40 = vpop.permute.xlu2 %232  ;;  %v145_v6 = vsel %vm142_vm3, %v1807_v36, %v1809_v37 }
  0x7e   :  { %v152_v21 = vmul.f32 %v148_v63, %v145_v6 }
  0x84   :  { %v1823_v43 = vpop.permute.xlu0 %168 }
  0x85   :  { %v177_v61 = vsel %vm174_vm0, %v1803_v34, %v1823_v43 }
  0x86   :  { %v1827_v45 = vpop.permute.xlu2 %268  ;;  %v184_v3 = vmul.f32 %v180_v60, %v177_v61  ;;  %v1947_v61 = vld [vmem:[%s2664_s2 + $0x30] ss:$0 sm:$0xff] }
  0x88   :  { %v384_v20 = vrot.slane %v184_v3, 4  ;;  %v181_v3 = vperm.slane %v1921_v17, 1 }
  0x8c   :  { %v1829_v46 = vpop.permute.xlu0 %200 }
  0x8d   :  { %v209_v15 = vsel %vm206_vm6, %v1805_v35, %v1829_v46 }
  0x8e   :  { %v1833_v48 = vpop.permute.xlu2 %262  ;;  %v216_v28 = vmul.f32 %v212_v12, %v209_v15 }
  0x8f   :  { %v274_v31 = vsel %vm270_vm4, %v1827_v45, %v1833_v48 }
  0x94   :  { %v1825_v44 = vpop.permute.xlu1 %230 }
  0x95   :  { %v241_v4 = vsel %vm238_vm2, %v1825_v44, %v1816_v40 }
  0x96   :  { %v1837_v51 = vpop.permute.xlu2 %328  ;;  %v248_v14 = vmul.f32 %v244_v1, %v241_v4  ;;  %v341_v4 = vperm.slane %v1921_v17, 7 }
  0x98   :  { %v396_v32 = vrot.slane %v248_v14, 4 }
  0x9c   :  { %v1831_v47 = vpop.permute.xlu1 %264 }
  0x9e   :  { %v331_v58 = vpop.permute.xlu2 %330 }
  0x9f   :  { %v336_v0 = vsel %vm334_vm1, %v1837_v51, %v331_v58 }
  0xa0   :  { %v344_v8 = vmul.f32 %v340_v62, %v336_v0 }
  0xa2   :  { %v431_v24 = vrot.slane %v344_v8, 4  ;;  %v149_v8 = vperm.slane %v1921_v17, 0 }
  0xa4   :  { %v267_v49 = vpop.permute.xlu1 %266  ;;  %v1835_v50 = vpop.permute.xlu0 %296 }
  0xa5   :  { %v272_v5 = vsel %vm270_vm4, %v1831_v47, %v267_v49  ;;  %v271_v0 = vsel %vm270_vm4, %v267_v49, %v1827_v45  ;;  %v1963_v45 = vmul.f32 %v278_v22, %v274_v31  ;;  %v339_v49 = vperm.slane %v1916_v16, 7 }
  0xa6   :  { %v280_v18 = vmul.f32 %v276_v2, %v272_v5  ;;  %v1931_v25 = vpop.permute.xlu2 %170  ;;  %v440_v5 = vsel %vm438_vm8, %v152_v21, %v384_v20  ;;  %v309_v20 = vperm.slane %v1921_v17, 6 }
  0xa8   :  { %v419_v33 = vrot.slane %v280_v18, 4 }
  0xac   :  { %v1839_v52 = vpop.permute.xlu1 %298 }
  0xad   :  { %v304_v13 = vsel %vm302_vm5, %v1835_v50, %v1839_v52 }
  0xae   :  { %v1841_v54 = vpop.permute.xlu0 %332  ;;  %v312_v26 = vmul.f32 %v308_v9, %v304_v13 }
  0xaf   :  { %v335_v6 = vsel %vm334_vm1, %v331_v58, %v1841_v54  ;;  %v281_v58 = vmul.f32 %v277_v30, %v271_v0  ;;  %v342_v0 = vperm.slane %v1889_v7, 7 }
  0xb0   :  { %v452_v15 = vsel %vm438_vm8, %v312_v26, %v431_v24  ;;  %v448_v24 = vsel %vm438_vm8, %v1811_v38, %v419_v33  ;;  %v444_v26 = vsel %vm438_vm8, %v216_v28, %v396_v32 }
  0xb1   :  { %v456_v33 = vpack.c.bf16 %v444_v26, %v440_v5  ;;  %v2016_v5 = vld [vmem:[%s2664_s2 + $0x38] ss:$0 sm:$0xff]  ;;  %v421_v26 = vrot.slane %v1963_v45, 4 }
  0xb4   :  { %v1850_v57 = vpop.permute.xlu1 %326 }
  0xb5   :  { %v337_v38 = vsel %vm334_vm1, %v1850_v57, %v1837_v51 }
  0xb6   :  { %v1854_v59 = vpop.permute.xlu0 %360 }
  0xbc   :  { %v1894_v10 = vpop.permute.xlu1 %294 }
  0xbe   :  { %v363_v19 = vpop.permute.xlu0 %362 }
  0xbf   :  { %v368_v23 = vsel %vm366_vm7, %v1854_v59, %v363_v19 }
  0xc0   :  { %v376_v27 = vmul.f32 %v1900_v11, %v368_v23 }
  0xc2   :  { %v464_v53 = vpack.c.bf16 %v376_v27, %v376_v27  ;;  %v273_v27 = vsel %vm270_vm4, %v1833_v48, %v1831_v47  ;;  %v118_v47 = vld [vmem:[%s2665_s5] sm:$0xff]  ;;  %v338_v48 = vsel %vm334_vm1, %v1841_v54, %v1850_v57  ;;  %v305_v54 = vsel %vm302_vm5, %v1894_v10, %v1835_v50 }
  0xc3   :  { %v279_v51 = vmul.f32 %v275_v29, %v273_v27  ;;  %v310_v57 = vperm.slane %v1889_v7, 6  ;;  %v176_v27 = vsel %vm174_vm0, %v1823_v43, %v1931_v25  ;;  %v2041_v43 = vld [vmem:[%s2666_s4] sm:$0xf] }
  0xc4   :  { %v482_v13 = vsel %vm477_vm9, %v464_v53, 0  ;;  %v365_v14 = vpop.permute.xlu1 %364  ;;  %v460_v53 = vpack.c.bf16 %v452_v15, %v448_v24  ;;  %v2001_v15 = vpop.permute.xlu2 %136 }
  0xc5   :  { %508 = vmatpush.bf16.msra.mxu2 %v482_v13  ;;  %v367_v18 = vsel %vm366_vm7, %v363_v19, %v365_v14  ;;  %v345_v19 = vmul.f32 %v341_v4, %v335_v6  ;;  %v1660_v6 = vmov 0   ;;  %v420_v13 = vrot.slane %v281_v58, 4 }
  0xc6   :  { %v377_v21 = vmul.f32 %v1947_v61, %v367_v18  ;;  %v301_v23 = vpop.permute.xlu0 %300  ;;  %1632 = vset.pattern.permute.xlu2 %v1660_v6  ;;  %v2011_v18 = vld [vmem:[%s2664_s2 + $0x20] ss:$0 sm:$0xff]  ;;  %1633 = vset.pattern.permute.xlu1 %v1660_v6 }
  0xc7   :  { %v303_v31 = vsel %vm302_vm5, %v1839_v52, %v301_v23  ;;  %v307_v52 = vperm.slane %v1916_v16, 6  ;;  %470 = vperm.xlu2 %1632, %v118_v47   ;;  %v432_v58 = vrot.slane %v345_v19, 4  ;;  %v306_v50 = vsel %vm302_vm5, %v301_v23, %v1894_v10  ;;  %1634 = vset.pattern.permute.xlu0 %v1660_v6 }
  0xc8   :  { %v465_v28 = vpack.c.bf16 %v377_v21, %v377_v21  ;;  %v313_v32 = vmul.f32 %v309_v20, %v303_v31  ;;  %v343_v21 = vmul.f32 %v339_v49, %v337_v38  ;;  %v346_v19 = vmul.f32 %v342_v0, %v338_v48 }
  0xc9   :  { %509 = vmatpush.bf16.msra.mxu2 %v460_v53  ;;  %v311_v53 = vmul.f32 %v307_v52, %v305_v54  ;;  %v314_v38 = vmul.f32 %v310_v57, %v306_v50  ;;  %v1442_v54 = vld [vmem:[%s2665_s5 + $0x10] sm:$0xff] }
  0xca   :  { %v485_v24 = vsel %vm477_vm9, %v465_v28, 0  ;;  %v453_v23 = vsel %vm438_vm8, %v313_v32, %v432_v58  ;;  %v245_v28 = vperm.slane %v1921_v17, 3  ;;  %v449_v32 = vsel %vm438_vm8, %v1818_v41, %v420_v13 }
  0xcb   :  { %v433_v58 = vrot.slane %v346_v19, 4  ;;  %v461_v50 = vpack.c.bf16 %v453_v23, %v449_v32  ;;  %v213_v41 = vperm.slane %v1921_v17, 2  ;;  %v2340_v17 = vld [vmem:[%s2667_s1 + $0xf0] sm:$0xff] }
  0xcc   :  { %v359_v31 = vpop.permute.xlu1 %358 }
  0xcd   :  { %510 = vmatpush.bf16.msra.mxu2 %v456_v33  ;;  %v369_v10 = vsel %vm366_vm7, %v359_v31, %v1854_v59  ;;  %v370_v45 = vsel %vm366_vm7, %v365_v14, %v359_v31  ;;  %v418_v33 = vrot.slane %v279_v51, 4  ;;  %v430_v14 = vrot.slane %v343_v21, 4 }
  0xce   :  { %v235_v47 = vpop.permute.xlu0 %234  ;;  %v375_v48 = vmul.f32 %v2011_v18, %v369_v10  ;;  %v378_v59 = vmul.f32 %v2016_v5, %v370_v45  ;;  %v185_v51 = vmul.f32 %v181_v3, %v176_v27  ;;  %v454_v45 = vsel %vm438_vm8, %v314_v38, %v433_v58  ;;  %v237_v27 = vpop.permute.xlu2 %236 }
  0xcf   :  { %v240_v6 = vsel %vm238_vm2, %v1816_v40, %v235_v47  ;;  %v144_v40 = vsel %vm142_vm3, %v1809_v37, %v2001_v15  ;;  %v451_v13 = vsel %vm438_vm8, %v311_v53, %v430_v14  ;;  %597 = vperm.xlu2 %1632, %v1442_v54   ;;  %v447_v53 = vsel %vm438_vm8, %v1813_v39, %v418_v33 }
  0xd0   :  { %1438 = vmatmul.msk.bf16.vlgmr.msra.gmra.mxu2 %vm473_vm10, %v2041_v43  ;;  %v466_v31 = vpack.c.bf16 %v378_v59, %v378_v59  ;;  %v249_v21 = vmul.f32 %v245_v28, %v240_v6  ;;  %v153_v37 = vmul.f32 %v149_v8, %v144_v40  ;;  %v243_v59 = vperm.slane %v1916_v16, 3 }
  0xd1   :  { %521 = vmatpush.bf16.msrb.mxu2 %v485_v24  ;;  %v463_v24 = vpack.c.bf16 %v375_v48, %v375_v48  ;;  %v450_v48 = vsel %vm438_vm8, %v1820_v42, %v421_v26  ;;  %v459_v14 = vpack.c.bf16 %v451_v13, %v447_v53  ;;  %v385_v32 = vrot.slane %v185_v51, 4 }
  0xd2   :  { %v488_v10 = vsel %vm477_vm9, %v466_v31, 0  ;;  %v462_v6 = vpack.c.bf16 %v454_v45, %v450_v48  ;;  %v246_v54 = vperm.slane %v1889_v7, 3  ;;  %v397_v58 = vrot.slane %v249_v21, 4 }
  0xd3   :  { %v479_v19 = vsel %vm477_vm9, %v463_v24, 0  ;;  %534 = vmatpush.bf16.msra.mxu3 %v488_v10  ;;  %v242_v39 = vsel %vm238_vm2, %v237_v27, %v1825_v44  ;;  %v239_v42 = vsel %vm238_vm2, %v235_v47, %v237_v27  ;;  %v179_v26 = vperm.slane %v1916_v16, 1 }
  0xd4   :  { %495 = vmatpush.bf16.msra.mxu0 %v479_v19  ;;  %v203_v23 = vpop.permute.xlu1 %202  ;;  %v441_v51 = vsel %vm438_vm8, %v153_v37, %v385_v32  ;;  %v247_v47 = vmul.f32 %v243_v59, %v242_v39  ;;  %v250_v13 = vmul.f32 %v246_v54, %v239_v42  ;;  %v211_v21 = vperm.slane %v1916_v16, 2 }
  0xd5   :  { %522 = vmatpush.bf16.msrb.mxu2 %v461_v50  ;;  %v208_v38 = vsel %vm206_vm6, %v1829_v46, %v203_v23  ;;  %v182_v46 = vperm.slane %v1889_v7, 1  ;;  %v214_v19 = vperm.slane %v1889_v7, 2  ;;  %v147_v10 = vperm.slane %v1916_v16, 0  ;;  %v2422_v16 = vld [vmem:[%s2667_s1 + $0x98] sm:$0xff] }
  0xd6   :  { %v173_v50 = vpop.permute.xlu0 %172  ;;  %v217_v24 = vmul.f32 %v213_v41, %v208_v38  ;;  %v150_v45 = vperm.slane %v1889_v7, 0  ;;  %v395_v48 = vrot.slane %v247_v47, 4  ;;  %v398_v38 = vrot.slane %v250_v13, 4  ;;  %v2334_v7 = vld [vmem:[%s2667_s1 + $0xb8] sm:$0xff] }
  0xd7   :  { %535 = vmatpush.bf16.msra.mxu3 %v462_v6  ;;  %v175_v33 = vsel %vm174_vm0, %v1931_v25, %v173_v50  ;;  %v178_v31 = vsel %vm174_vm0, %v173_v50, %v1803_v34 }
  0xd8   :  { %496 = vmatpush.bf16.msra.mxu0 %v459_v14  ;;  %v445_v44 = vsel %vm438_vm8, %v217_v24, %v397_v58  ;;  %v183_v25 = vmul.f32 %v179_v26, %v178_v31  ;;  %v186_v34 = vmul.f32 %v182_v46, %v175_v33 }
  0xd9   :  { %v457_v40 = vpack.c.bf16 %v445_v44, %v441_v51 }
  0xda   :  { %v383_v58 = vrot.slane %v183_v25, 4  ;;  %v386_v50 = vrot.slane %v186_v34, 4 }
  0xdb   :  { %523 = vmatpush.bf16.msrb.mxu2 %v457_v40 }
  0xdc   :  { %v205_v37 = vpop.permute.xlu1 %204 }
  0xdd   :  { %v207_v27 = vsel %vm206_vm6, %v203_v23, %v205_v37  ;;  %v210_v53 = vsel %vm206_vm6, %v205_v37, %v1805_v35 }
  0xde   :  { %v139_v14 = vpop.permute.xlu0 %138  ;;  %v215_v6 = vmul.f32 %v211_v21, %v210_v53  ;;  %v218_v32 = vmul.f32 %v214_v19, %v207_v27 }
  0xdf   :  { %v143_v24 = vsel %vm142_vm3, %v2001_v15, %v139_v14  ;;  %v146_v23 = vsel %vm142_vm3, %v139_v14, %v1807_v36 }
  0xe0   :  { %v151_v35 = vmul.f32 %v147_v10, %v146_v23  ;;  %v154_v39 = vmul.f32 %v150_v45, %v143_v24  ;;  %1439 = vmatmul.msk.bf16.vlgmr.msrb.gmra.mxu2 %vm473_vm10, %v2041_v43  ;;  %v443_v42 = vsel %vm438_vm8, %v215_v6, %v395_v48  ;;  %v446_v33 = vsel %vm438_vm8, %v218_v32, %v398_v38 }
  0xe1   :  { %v1661_v24 = vmov 512.0  }
  0xe2   :  { %v439_v31 = vsel %vm438_vm8, %v151_v35, %v383_v58  ;;  %v442_v15 = vsel %vm438_vm8, %v154_v39, %v386_v50  ;;  %1640 = vrcp.f32 %v1661_v24 }
  0xe3   :  { %v455_v51 = vpack.c.bf16 %v443_v42, %v439_v31  ;;  %v458_v44 = vpack.c.bf16 %v446_v33, %v442_v15 }
  0xe5   :  { %497 = vmatpush.bf16.msra.mxu0 %v455_v51  ;;  %536 = vmatpush.bf16.msra.mxu3 %v458_v44 }
  0xe8   :  { %1437 = vmatmul.msk.bf16.vlgmr.msra.gmra.mxu0 %vm473_vm10, %v2041_v43  ;;  %1440 = vmatmul.msk.bf16.vlgmr.msra.gmra.mxu3 %vm473_vm10, %v2041_v43  ;;  %v1641_v43 = vpop.eup %1640 }
  0xe9   :  { %v552_v23 = vmul.f32 512.0, %v1641_v43  ;;  %vm556_vm11 = vweird.f32 %v1641_v43 }
  0xeb   :  { %v553_v35 = vsub.f32 1.0, %v552_v23 }
  0xed   :  { %v554_v39 = vmul.f32 %v1641_v43, %v553_v35 }
  0xef   :  { %v555_v42 = vadd.f32 %v1641_v43, %v554_v39 }
  0xf1   :  { %v2141_v33 = vsel %vm556_vm11, %v1641_v43, %v555_v42 }
 0x121   :  { %v471_v47 = vpop.permute.xlu2 %470 }
 0x153   :  { %v512_v36 = vpop.f32.mrf.mxu2 }
 0x154   :  { %v513_v37 = vadd.f32 %v512_v36, %v471_v47 }
 0x15b   :  { %v514_v40 = vpop.f32.mrf.mxu2 }
 0x163   :  { %v525_v13 = vpop.f32.mrf.mxu2 }
 0x164   :  { %v526_v27 = vadd.f32 %v525_v13, %v471_v47 }
 0x165   :  { %v499_v25 = vpop.f32.mrf.mxu0 }
 0x166   :  { %v500_v34 = vadd.f32 %v499_v25, %v471_v47 }
 0x168   :  { %v546_v53 = vadd.f32 %v513_v37, %v500_v34 }
 0x16a   :  { %v547_v6 = vadd.f32 %v546_v53, %v526_v27 }
 0x16b   :  { %v527_v48 = vpop.f32.mrf.mxu2  ;;  %v538_v38 = vpop.f32.mrf.mxu3 }
 0x16c   :  { %v539_v14 = vadd.f32 %v538_v38, %v471_v47 }
 0x16d   :  { %v501_v32 = vpop.f32.mrf.mxu0 }
 0x16e   :  { %v548_v58 = vadd.f32 %v547_v6, %v539_v14 }
 0x170   :  { %549 = vadd.xlane.f32.xlu0 %v548_v58 }
 0x173   :  { %v540_v50 = vpop.f32.mrf.mxu3 }
 0x1e3   :  { %v550_v31 = vpop.xlane.xlu0 %549 }
 0x1e4   :  { %v558_v15 = vmul.f32 %v2141_v33, %v550_v31  ;;  %v598_v31 = vpop.permute.xlu2 %597 }
 0x1e6   :  { %v559_v51 = vsub.f32 %v500_v34, %v558_v15  ;;  %v560_v44 = vsub.f32 %v513_v37, %v558_v15  ;;  %v561_v36 = vsub.f32 %v526_v27, %v558_v15  ;;  %v562_v40 = vsub.f32 %v539_v14, %v558_v15  ;;  %v1441_v14 = vld [vmem:[%s2665_s5 + $0x8] sm:$0xff] }
 0x1e8   :  { %v563_v47 = vmul.f32 %v559_v51, %v559_v51  ;;  %v564_v13 = vmul.f32 %v560_v44, %v560_v44  ;;  %v565_v25 = vmul.f32 %v561_v36, %v561_v36  ;;  %v566_v48 = vmul.f32 %v562_v40, %v562_v40 }
 0x1ea   :  { %v567_v53 = vadd.f32 %v564_v13, %v563_v47 }
 0x1ec   :  { %v568_v38 = vadd.f32 %v567_v53, %v565_v25 }
 0x1ee   :  { %v569_v6 = vadd.f32 %v568_v38, %v566_v48 }
 0x1f0   :  { %570 = vadd.xlane.f32.xlu1 %v569_v6 }
 0x263   :  { %v571_v32 = vpop.xlane.xlu1 %570 }
 0x264   :  { %v572_v58 = vmul.f32 %v571_v32, %v2141_v33 }
 0x266   :  { %v573_v50 = vmax.f32 %v572_v58, 0.0 }
 0x268   :  { %v574_v24 = vadd.f32 1e-05, %v573_v50 }
 0x26a   :  { %1642 = vrsqrt.f32 %v574_v24  ;;  %vm581_vm13 = vweird.f32 %v574_v24 }
 0x270   :  { %v1643_v43 = vpop.eup %1642 }
 0x271   :  { %v576_v23 = vmul.f32 %v1643_v43, %v574_v24  ;;  %vm582_vm12 = vweird.f32 %v1643_v43 }
 0x272   :  { %vm583_vm14 = vmor %vm581_vm13, %vm582_vm12 }
 0x273   :  { %v577_v34 = vmul.f32 %v1643_v43, %v576_v23 }
 0x275   :  { %v578_v37 = vmul.f32 0.5, %v577_v34 }
 0x277   :  { %v579_v27 = vsub.f32 1.5, %v578_v37 }
 0x279   :  { %v580_v35 = vmul.f32 %v1643_v43, %v579_v27 }
 0x27b   :  { %v584_v39 = vsel %vm583_vm14, %v1643_v43, %v580_v35 }
 0x27c   :  { %v585_v42 = vmul.f32 %v1441_v14, %v584_v39 }
 0x27e   :  { %588 = vperm.xlu2 %1632, %v585_v42  }
 0x2d8   :  { %v589_v15 = vpop.permute.xlu2 %588 }
 0x2d9   :  { %v593_v47 = vmul.f32 %v589_v15, %v561_v36  ;;  %v594_v13 = vmul.f32 %v589_v15, %v562_v40  ;;  %v591_v48 = vmul.f32 %v589_v15, %v559_v51  ;;  %v592_v58 = vmul.f32 %v589_v15, %v560_v44 }
 0x2db   :  { %v602_v25 = vadd.f32 %v598_v31, %v593_v47  ;;  %v603_v53 = vadd.f32 %v598_v31, %v594_v13  ;;  %v600_v32 = vadd.f32 %v598_v31, %v591_v48  ;;  %v601_v51 = vadd.f32 %v598_v31, %v592_v58 }
 0x2dd   :  { %v2148_v38 = vmax.f32 %v602_v25, 0.0  ;;  %v2150_v6 = vmax.f32 %v603_v53, 0.0  ;;  %v2158_v36 = vmax.f32 %v600_v32, 0.0  ;;  %v2166_v40 = vmax.f32 %v601_v51, 0.0 }
 0x2df   :  { %695 = vrot.lane.b32.xlu1 %v2150_v6, %s1657_s29  ;;  %693 = vrot.lane.b32.xlu0 %v2148_v38, %s1657_s29 }
 0x2e0   :  { %725 = vrot.lane.b32.xlu2 %v2148_v38, %s1659_s13 }
 0x2e7   :  { %677 = vrot.lane.b32.xlu1 %v2148_v38, %s1656_s28  ;;  %689 = vrot.lane.b32.xlu0 %v2158_v36, %s1657_s29 }
 0x2e8   :  { %727 = vrot.lane.b32.xlu2 %v2150_v6, %s1659_s13 }
 0x2ef   :  { %707 = vrot.lane.b32.xlu1 %v2166_v40, %s1658_s30  ;;  %679 = vrot.lane.b32.xlu0 %v2150_v6, %s1656_s28 }
 0x2f0   :  { %721 = vrot.lane.b32.xlu2 %v2158_v36, %s1659_s13 }
 0x2f7   :  { %645 = vrot.lane.b32.xlu1 %v2148_v38, %s1654_s26  ;;  %673 = vrot.lane.b32.xlu0 %v2158_v36, %s1656_s28 }
 0x2f8   :  { %723 = vrot.lane.b32.xlu2 %v2166_v40, %s1659_s13  ;;  %s1666_s13 = smov 7  }
 0x2ff   :  { %675 = vrot.lane.b32.xlu1 %v2166_v40, %s1656_s28  ;;  %659 = vrot.lane.b32.xlu0 %v2166_v40, %s1655_s27 }
 0x300   :  { %709 = vrot.lane.b32.xlu2 %v2148_v38, %s1658_s30 }
 0x307   :  { %611 = vrot.lane.b32.xlu1 %v2166_v40, %s1652_s25  ;;  %647 = vrot.lane.b32.xlu0 %v2150_v6, %s1654_s26 }
 0x308   :  { %711 = vrot.lane.b32.xlu2 %v2150_v6, %s1658_s30 }
 0x30f   :  { %629 = vrot.lane.b32.xlu1 %v2148_v38, %s1653_s0  ;;  %613 = vrot.lane.b32.xlu0 %v2148_v38, %s1652_s25 }
 0x310   :  { %705 = vrot.lane.b32.xlu2 %v2158_v36, %s1658_s30  ;;  %s1665_s30 = smov 121  }
 0x317   :  { %615 = vrot.lane.b32.xlu1 %v2150_v6, %s1652_s25  ;;  %641 = vrot.lane.b32.xlu0 %v2158_v36, %s1654_s26 }
 0x318   :  { %691 = vrot.lane.b32.xlu2 %v2166_v40, %s1657_s29  ;;  %s1664_s29 = smov 8  }
 0x31f   :  { %625 = vrot.lane.b32.xlu1 %v2158_v36, %s1653_s0  ;;  %631 = vrot.lane.b32.xlu0 %v2150_v6, %s1653_s0 }
 0x320   :  { %643 = vrot.lane.b32.xlu2 %v2166_v40, %s1654_s26  ;;  %s1663_s26 = smov 119  }
 0x328   :  { %661 = vrot.lane.b32.xlu2 %v2148_v38, %s1655_s27 }
 0x330   :  { %663 = vrot.lane.b32.xlu2 %v2150_v6, %s1655_s27 }
 0x338   :  { %627 = vrot.lane.b32.xlu2 %v2166_v40, %s1653_s0 }
 0x33a   :  { %v726_v44 = vpop.permute.xlu2 %725 }
 0x340   :  { %657 = vrot.lane.b32.xlu2 %v2158_v36, %s1655_s27 }
 0x342   :  { %v728_v50 = vpop.permute.xlu2 %727 }
 0x343   :  { %v729_v24 = vsel %vm366_vm7, %v726_v44, %v728_v50 }
 0x344   :  { %v735_v43 = vmul.f32 %v1947_v61, %v729_v24 }
 0x346   :  { %v755_v23 = vpack.c.bf16 %v735_v43, %v735_v43 }
 0x348   :  { %609 = vrot.lane.b32.xlu2 %v2158_v36, %s1652_s25  ;;  %v774_v34 = vsel %vm438_vm8, %v755_v23, 0 }
 0x349   :  { %808 = vmatpush.bf16.msra.mxu2 %v774_v34 }
 0x34a   :  { %v722_v37 = vpop.permute.xlu2 %721 }
 0x34b   :  { %v732_v27 = vsel %vm366_vm7, %v728_v50, %v722_v37 }
 0x34c   :  { %v736_v14 = vmul.f32 %v2016_v5, %v732_v27 }
 0x34e   :  { %v756_v35 = vpack.c.bf16 %v736_v14, %v736_v14 }
 0x350   :  { %v777_v39 = vsel %vm438_vm8, %v756_v35, 0 }
 0x351   :  { %821 = vmatpush.bf16.msrb.mxu3 %v777_v39  ;;  %v696_v42 = vpop.permute.xlu1 %695  ;;  %v694_v31 = vpop.permute.xlu0 %693 }
 0x352   :  { %v724_v61 = vpop.permute.xlu2 %723 }
 0x353   :  { %v730_v15 = vsel %vm366_vm7, %v724_v61, %v726_v44  ;;  %v731_v47 = vsel %vm366_vm7, %v722_v37, %v724_v61  ;;  %v697_v44 = vsel %vm302_vm5, %v694_v31, %v696_v42 }
 0x354   :  { %v733_v13 = vmul.f32 %v2011_v18, %v731_v47  ;;  %v734_v25 = vmul.f32 %v1900_v11, %v730_v15  ;;  %v703_v34 = vmul.f32 %v697_v44, %v309_v20 }
 0x356   :  { %v753_v53 = vpack.c.bf16 %v733_v13, %v733_v13  ;;  %v754_v48 = vpack.c.bf16 %v734_v25, %v734_v25 }
 0x358   :  { %v768_v5 = vsel %vm438_vm8, %v753_v53, 0  ;;  %v771_v32 = vsel %vm438_vm8, %v754_v48, 0 }
 0x359   :  { %782 = vmatpush.bf16.msrb.mxu0 %v768_v5  ;;  %795 = vmatpush.bf16.msra.mxu1 %v771_v32  ;;  %v678_v58 = vpop.permute.xlu1 %677  ;;  %v690_v51 = vpop.permute.xlu0 %689 }
 0x35a   :  { %v710_v50 = vpop.permute.xlu2 %709  ;;  %v700_v35 = vsel %vm302_vm5, %v696_v42, %v690_v51 }
 0x361   :  { %v708_v24 = vpop.permute.xlu1 %707  ;;  %v680_v43 = vpop.permute.xlu0 %679 }
 0x362   :  { %v712_v23 = vpop.permute.xlu2 %711  ;;  %v681_v11 = vsel %vm270_vm4, %v678_v58, %v680_v43 }
 0x363   :  { %v713_v18 = vsel %vm334_vm1, %v710_v50, %v712_v23  ;;  %v687_v27 = vmul.f32 %v681_v11, %v277_v30 }
 0x364   :  { %v719_v37 = vmul.f32 %v713_v18, %v341_v4  ;;  %v704_v4 = vmul.f32 %v700_v35, %v310_v57 }
 0x365   :  { %v747_v47 = vpack.c.bf16 %v687_v27, %v2148_v38  ;;  %v714_v38 = vsel %vm334_vm1, %v708_v24, %v710_v50 }
 0x366   :  { %v751_v14 = vpack.c.bf16 %v719_v37, %v703_v34 }
 0x368   :  { %809 = vmatpush.bf16.msra.mxu2 %v751_v14 }
 0x369   :  { %v646_v39 = vpop.permute.xlu1 %645  ;;  %v674_v61 = vpop.permute.xlu0 %673 }
 0x36a   :  { %v706_v15 = vpop.permute.xlu2 %705  ;;  %v684_v13 = vsel %vm270_vm4, %v680_v43, %v674_v61 }
 0x36b   :  { %v716_v20 = vsel %vm334_vm1, %v712_v23, %v706_v15  ;;  %v688_v42 = vmul.f32 %v684_v13, %v278_v22  ;;  %v715_v53 = vsel %vm334_vm1, %v706_v15, %v708_v24  ;;  %v718_v24 = vmul.f32 %v714_v38, %v340_v62 }
 0x36c   :  { %v720_v30 = vmul.f32 %v716_v20, %v342_v0  ;;  %810 = vmatpush.bf16.msra.mxu2 %v747_v47  ;;  %v717_v43 = vmul.f32 %v715_v53, %v339_v49 }
 0x36d   :  { %v748_v57 = vpack.c.bf16 %v688_v42, %v2150_v6 }
 0x36e   :  { %v752_v25 = vpack.c.bf16 %v720_v30, %v704_v4 }
 0x370   :  { %822 = vmatpush.bf16.msrb.mxu3 %v752_v25 }
 0x371   :  { %v676_v48 = vpop.permute.xlu1 %675  ;;  %v2265_v5 = vpop.permute.xlu0 %659 }
 0x372   :  { %v692_v32 = vpop.permute.xlu2 %691  ;;  %v682_v0 = vsel %vm270_vm4, %v676_v48, %v678_v58  ;;  %v683_v22 = vsel %vm270_vm4, %v674_v61, %v676_v48 }
 0x373   :  { %v698_v44 = vsel %vm302_vm5, %v692_v32, %v694_v31  ;;  %v699_v50 = vsel %vm302_vm5, %v690_v51, %v692_v32  ;;  %v685_v23 = vmul.f32 %v683_v22, %v275_v29  ;;  %v686_v31 = vmul.f32 %v682_v0, %v276_v2  ;;  %v2329_v32 = vld [vmem:[%s2667_s1 + $0xf8] sm:$0xff]  ;;  %v2353_v0 = vld [vmem:[%s2667_s1 + $0xb0] sm:$0xff] }
 0x374   :  { %v701_v6 = vmul.f32 %v699_v50, %v307_v52  ;;  %v702_v58 = vmul.f32 %v698_v44, %v308_v9  ;;  %823 = vmatpush.bf16.msrb.mxu3 %v748_v57 }
 0x375   :  { %v745_v52 = vpack.c.bf16 %v685_v23, %v2158_v36  ;;  %v746_v34 = vpack.c.bf16 %v686_v31, %v2166_v40 }
 0x376   :  { %v749_v51 = vpack.c.bf16 %v717_v43, %v701_v6  ;;  %v750_v11 = vpack.c.bf16 %v718_v24, %v702_v58 }
 0x378   :  { %783 = vmatpush.bf16.msrb.mxu0 %v749_v51  ;;  %796 = vmatpush.bf16.msra.mxu1 %v750_v11  ;;  %v2391_v51 = vld [vmem:[%s2667_s1 + $0xa0] sm:$0xff] }
 0x379   :  { %v2288_v62 = vpop.permute.xlu1 %611  ;;  %v648_v49 = vpop.permute.xlu0 %647  ;;  %v2396_v11 = vld [vmem:[%s2667_s1 + $0xe0] sm:$0xff] }
 0x37a   :  { %v644_v18 = vpop.permute.xlu2 %643  ;;  %v649_v40 = vsel %vm206_vm6, %v646_v39, %v648_v49 }
 0x37b   :  { %v650_v9 = vsel %vm206_vm6, %v644_v18, %v646_v39  ;;  %v656_v13 = vmul.f32 %v649_v40, %v214_v19  ;;  %v2465_v40 = vld [vmem:[%s2667_s1 + $0xc8] sm:$0xff] }
 0x37c   :  { %784 = vmatpush.bf16.msrb.mxu0 %v745_v52  ;;  %797 = vmatpush.bf16.msra.mxu1 %v746_v34  ;;  %v655_v14 = vmul.f32 %v650_v9, %v213_v41 }
 0x381   :  { %v614_v29 = vpop.permute.xlu0 %613  ;;  %v630_v2 = vpop.permute.xlu1 %629 }
 0x382   :  { %v662_v37 = vpop.permute.xlu2 %661  ;;  %v618_v39 = vsel %vm142_vm3, %v2288_v62, %v614_v29 }
 0x383   :  { %v666_v27 = vsel %vm238_vm2, %v2265_v5, %v662_v37  ;;  %v623_v53 = vmul.f32 %v618_v39, %v149_v8 }
 0x384   :  { %v671_v36 = vmul.f32 %v666_v27, %v245_v28  ;;  %v2445_v27 = vld [vmem:[%s2667_s1 + $0xd0] sm:$0xff] }
 0x386   :  { %v743_v35 = vpack.c.bf16 %v671_v36, %v655_v14  ;;  %v1588_v14 = vld [vmem:[%s2667_s1 + $0x28] sm:$0xff] }
 0x387   :  { %v1596_v36 = vld [vmem:[%s2667_s1 + $0x68] sm:$0xff] }
 0x388   :  { %811 = vmatpush.bf16.msra.mxu2 %v743_v35  ;;  %v2460_v35 = vld [vmem:[%s2667_s1 + $0x88] sm:$0xff] }
 0x389   :  { %v642_v61 = vpop.permute.xlu0 %641  ;;  %v616_v41 = vpop.permute.xlu1 %615 }
 0x38a   :  { %v664_v15 = vpop.permute.xlu2 %663  ;;  %v617_v28 = vsel %vm142_vm3, %v614_v29, %v616_v41  ;;  %v651_v8 = vsel %vm206_vm6, %v642_v61, %v644_v18 }
 0x38b   :  { %v665_v47 = vsel %vm238_vm2, %v662_v37, %v664_v15  ;;  %v624_v19 = vmul.f32 %v617_v28, %v150_v45  ;;  %v652_v45 = vsel %vm206_vm6, %v648_v49, %v642_v61  ;;  %v654_v43 = vmul.f32 %v651_v8, %v212_v12  ;;  %v1587_v61 = vld [vmem:[%s2667_s1 + $0x20] sm:$0xff]  ;;  %v1594_v28 = vld [vmem:[%s2667_s1 + $0x58] sm:$0xff] }
 0x38c   :  { %v672_v20 = vmul.f32 %v665_v47, %v246_v54  ;;  %v653_v24 = vmul.f32 %v652_v45, %v211_v21  ;;  %v2380_v21 = vld [vmem:[%s2667_s1 + $0xe8] sm:$0xff]  ;;  %v2478_v47 = vld [vmem:[%s2667_s1 + $0x80] sm:$0xff] }
 0x38e   :  { %v744_v4 = vpack.c.bf16 %v672_v20, %v656_v13  ;;  %v2483_v13 = vld [vmem:[%s2667_s1 + $0xc0] sm:$0xff]  ;;  %v895_v20 = vld.sshfl [vmem:[#allocation1 + $0x10] sm:$0xff pattern:$0x75316420] }
 0x38f   :  { %v903_v39 = vpack.c.bf16 %v895_v20, %v895_v20 }
 0x390   :  { %824 = vmatpush.bf16.msrb.mxu3 %v744_v4  ;;  %v1586_v4 = vld [vmem:[%s2667_s1 + $0x18] sm:$0xff] }
 0x391   :  { %v632_v30 = vpop.permute.xlu0 %631  ;;  %v626_v12 = vpop.permute.xlu1 %625 }
 0x392   :  { %v633_v42 = vsel %vm174_vm0, %v630_v2, %v632_v30  ;;  %v628_v25 = vpop.permute.xlu2 %627 }
 0x393   :  { %v640_v54 = vmul.f32 %v633_v42, %v182_v46  ;;  %v634_v38 = vsel %vm174_vm0, %v628_v25, %v630_v2  ;;  %v635_v31 = vsel %vm174_vm0, %v626_v12, %v628_v25  ;;  %v1590_v2 = vld [vmem:[%s2667_s1 + $0x38] sm:$0xff]  ;;  %v1585_v42 = vld [vmem:[%s2667_s1 + $0x10] sm:$0xff] }
 0x394   :  { %v639_v48 = vmul.f32 %v634_v38, %v181_v3  ;;  %v757_v3 = vld [vmem:[%s2668_s6] sm:$0xf]  ;;  %v638_v9 = vmul.f32 %v635_v31, %v180_v60  ;;  %v1593_v25 = vld [vmem:[%s2667_s1 + $0x50] sm:$0xff] }
 0x395   :  { %v740_v57 = vpack.c.bf16 %v640_v54, %v624_v19  ;;  %v1584_v19 = vld [vmem:[%s2667_s1 + $0x8] sm:$0xff]  ;;  %v1583_v38 = vld [vmem:[%s2667_s1] sm:$0xff] }
 0x396   :  { %v739_v46 = vpack.c.bf16 %v639_v48, %v623_v53  ;;  %v1592_v54 = vld [vmem:[%s2667_s1 + $0x48] sm:$0xff]  ;;  %v1591_v53 = vld [vmem:[%s2667_s1 + $0x40] sm:$0xff] }
 0x397   :  { %825 = vmatpush.bf16.msrb.mxu3 %v740_v57  ;;  %v893_v48 = vld.sshfl [vmem:[#allocation1] sm:$0xff pattern:$0x75316420]  ;;  %v894_v57 = vld.sshfl [vmem:[#allocation1 + $0x8] sm:$0xff pattern:$0x75316420] }
 0x398   :  { %812 = vmatpush.bf16.msra.mxu2 %v739_v46  ;;  %v901_v46 = vpack.c.bf16 %v893_v48, %v893_v48 }
 0x39a   :  { %v658_v22 = vpop.permute.xlu2 %657  ;;  %1446 = vmatmul.msk.bf16.vlgmr.msrb.gmra.mxu3 %vm763_vm15, %v757_v3 }
 0x39b   :  { %1136 = vmatpush.bf16.msra.mxu3 %v2329_v32  ;;  %v667_v44 = vsel %vm238_vm2, %v658_v22, %v2265_v5  ;;  %v668_v50 = vsel %vm238_vm2, %v664_v15, %v658_v22  ;;  %1445 = vmatmul.msk.bf16.vlgmr.msra.gmra.mxu2 %vm763_vm15, %v757_v3  ;;  %v2375_v5 = vld [vmem:[%s2667_s1 + $0xa8] sm:$0xff]  ;;  %v1595_v15 = vld [vmem:[%s2667_s1 + $0x60] sm:$0xff] }
 0x39c   :  { %1123 = vmatpush.bf16.msrb.mxu2 %v2334_v7  ;;  %v669_v6 = vmul.f32 %v668_v50, %v243_v59  ;;  %v670_v58 = vmul.f32 %v667_v44, %v244_v1  ;;  %v636_v1 = vsel %vm174_vm0, %v632_v30, %v626_v12 }
 0x39d   :  { %v637_v34 = vmul.f32 %v636_v1, %v179_v26 }
 0x39e   :  { %v741_v23 = vpack.c.bf16 %v669_v6, %v653_v24  ;;  %v742_v59 = vpack.c.bf16 %v670_v58, %v654_v43 }
 0x39f   :  { %1137 = vmatpush.bf16.msra.mxu3 %v2340_v17 }
 0x3a0   :  { %1124 = vmatpush.bf16.msrb.mxu2 %v2353_v0  ;;  %785 = vmatpush.bf16.msrb.mxu0 %v741_v23 }
 0x3a1   :  { %798 = vmatpush.bf16.msra.mxu1 %v742_v59 }
 0x3a2   :  { %v610_v49 = vpop.permute.xlu2 %609 }
 0x3a3   :  { %1138 = vmatpush.bf16.msra.mxu3 %v2380_v21  ;;  %v619_v18 = vsel %vm142_vm3, %v610_v49, %v2288_v62  ;;  %v620_v52 = vsel %vm142_vm3, %v616_v41, %v610_v49  ;;  %v2440_v62 = vld [vmem:[%s2667_s1 + $0x90] sm:$0xff]  ;;  %v896_v41 = vld.sshfl [vmem:[#allocation1 + $0x18] sm:$0xff pattern:$0x75316420] }
 0x3a4   :  { %1125 = vmatpush.bf16.msrb.mxu2 %v2375_v5  ;;  %v621_v29 = vmul.f32 %v620_v52, %v147_v10  ;;  %v622_v37 = vmul.f32 %v619_v18, %v148_v63  ;;  %v1589_v63 = vld [vmem:[%s2667_s1 + $0x30] sm:$0xff]  ;;  %v904_v30 = vpack.c.bf16 %v896_v41, %v896_v41 }
 0x3a5   :  { %v1597_v10 = vld [vmem:[%s2667_s1 + $0x70] sm:$0xff]  ;;  %s1662_s1 = smov 120  }
 0x3a6   :  { %v737_v26 = vpack.c.bf16 %v637_v34, %v621_v29  ;;  %v738_v60 = vpack.c.bf16 %v638_v9, %v622_v37  ;;  %v1149_v29 = vld [vmem:[%s2670_s9] sm:$0xff] }
 0x3a7   :  { %1139 = vmatpush.bf16.msra.mxu3 %v2396_v11 }
 0x3a8   :  { %1126 = vmatpush.bf16.msrb.mxu2 %v2391_v51  ;;  %786 = vmatpush.bf16.msrb.mxu0 %v737_v26 }
 0x3a9   :  { %799 = vmatpush.bf16.msra.mxu1 %v738_v60 }
 0x3ab   :  { %1140 = vmatpush.bf16.msra.mxu3 %v2427_v56  ;;  %1443 = vmatmul.msk.bf16.vlgmr.msrb.gmra.mxu0 %vm763_vm15, %v757_v3 }
 0x3ac   :  { %1097 = vmatpush.bf16.msra.mxu0 %v1590_v2  ;;  %1127 = vmatpush.bf16.msrb.mxu2 %v2422_v16 }
 0x3ad   :  { %1110 = vmatpush.bf16.msrb.mxu1 %v1598_v55 }
 0x3ae   :  { %1444 = vmatmul.msk.bf16.vlgmr.msra.gmra.mxu1 %vm763_vm15, %v757_v3  ;;  %v902_v3 = vpack.c.bf16 %v894_v57, %v894_v57 }
 0x3af   :  { %1141 = vmatpush.bf16.msra.mxu3 %v2445_v27 }
 0x3b0   :  { %1098 = vmatpush.bf16.msra.mxu0 %v1589_v63  ;;  %1128 = vmatpush.bf16.msrb.mxu2 %v2440_v62 }
 0x3b1   :  { %1111 = vmatpush.bf16.msrb.mxu1 %v1597_v10 }
 0x3b3   :  { %1142 = vmatpush.bf16.msra.mxu3 %v2465_v40 }
 0x3b4   :  { %1099 = vmatpush.bf16.msra.mxu0 %v1588_v14  ;;  %1129 = vmatpush.bf16.msrb.mxu2 %v2460_v35 }
 0x3b5   :  { %1112 = vmatpush.bf16.msrb.mxu1 %v1596_v36 }
 0x3b7   :  { %1143 = vmatpush.bf16.msra.mxu3 %v2483_v13 }
 0x3b8   :  { %1100 = vmatpush.bf16.msra.mxu0 %v1587_v61  ;;  %1130 = vmatpush.bf16.msrb.mxu2 %v2478_v47 }
 0x3b9   :  { %1113 = vmatpush.bf16.msrb.mxu1 %v1595_v15 }
 0x3ba   :  { %1144 = vmatmul.bf16.vlgmr.msra.gmra.mxu3 %v904_v30 }
 0x3bb   :  { %1378 = vmatpush.bf16.xpose.msrb.mxu3 %v1598_v55  ;;  %1131 = vmatmul.bf16.vlgmr.msrb.gmra.mxu2 %v903_v39  ;;  %v2538_v55 = vld [vmem:[%s2669_s3 + $0x8] ss:$0 sm:$0xff] }
 0x3bc   :  { %1365 = vmatpush.bf16.xpose.msra.mxu2 %v1590_v2  ;;  %1101 = vmatpush.bf16.msra.mxu0 %v1586_v4  ;;  %v2533_v2 = vld [vmem:[%s2669_s3] sm:$0xff] }
 0x3bd   :  { %1114 = vmatpush.bf16.msrb.mxu1 %v1594_v28  ;;  %v1168_v26 = vperm.slane %v2533_v2, 5  ;;  %v1164_v39 = vperm.slane %v2533_v2, 3 }
 0x3c0   :  { %1102 = vmatpush.bf16.msra.mxu0 %v1585_v42 }
 0x3c1   :  { %1115 = vmatpush.bf16.msrb.mxu1 %v1593_v25 }
 0x3c3   :  { %1379 = vmatpush.bf16.xpose.msrb.mxu3 %v1597_v10  ;;  %v1176_v10 = vperm.slane %v2533_v2, 7 }
 0x3c4   :  { %1366 = vmatpush.bf16.xpose.msra.mxu2 %v1589_v63  ;;  %1103 = vmatpush.bf16.msra.mxu0 %v1584_v19 }
 0x3c5   :  { %1116 = vmatpush.bf16.msrb.mxu1 %v1592_v54 }
 0x3c8   :  { %1104 = vmatpush.bf16.msra.mxu0 %v1583_v38 }
 0x3c9   :  { %1117 = vmatpush.bf16.msrb.mxu1 %v1591_v53 }
 0x3cb   :  { %1380 = vmatpush.bf16.xpose.msrb.mxu3 %v1596_v36  ;;  %1105 = vmatmul.bf16.vlgmr.msra.gmra.mxu0 %v901_v46 }
 0x3cc   :  { %1367 = vmatpush.bf16.xpose.msra.mxu2 %v1588_v14  ;;  %1118 = vmatmul.bf16.vlgmr.msrb.gmra.mxu1 %v902_v3  ;;  %v1160_v3 = vperm.slane %v2533_v2, 2 }
 0x3d3   :  { %1381 = vmatpush.bf16.xpose.msrb.mxu3 %v1595_v15 }
 0x3d4   :  { %1368 = vmatpush.bf16.xpose.msra.mxu2 %v1587_v61 }
 0x3db   :  { %1382 = vmatpush.bf16.xpose.msrb.mxu3 %v1594_v28 }
 0x3dc   :  { %1369 = vmatpush.bf16.xpose.msra.mxu2 %v1586_v4  ;;  %v1172_v4 = vperm.slane %v2533_v2, 6 }
 0x3e3   :  { %1383 = vmatpush.bf16.xpose.msrb.mxu3 %v1593_v25  ;;  %v1156_v25 = vperm.slane %v2533_v2, 1 }
 0x3e4   :  { %1370 = vmatpush.bf16.xpose.msra.mxu2 %v1585_v42 }
 0x3eb   :  { %1384 = vmatpush.bf16.xpose.msrb.mxu3 %v1592_v54 }
 0x3ec   :  { %1371 = vmatpush.bf16.xpose.msra.mxu2 %v1584_v19 }
 0x3f3   :  { %1385 = vmatpush.bf16.xpose.msrb.mxu3 %v1591_v53 }
 0x3f4   :  { %1372 = vmatpush.bf16.xpose.msra.mxu2 %v1583_v38 }
 0x41d   :  { %v2511_v8 = vpop.f32.mrf.mxu3 }
 0x41e   :  { %v2513_v45 = vpop.f32.mrf.mxu2 }
 0x425   :  { %v829_v22 = vpop.f32.mrf.mxu3 }
 0x426   :  { %v816_v44 = vpop.f32.mrf.mxu2  ;;  %v1152_v22 = vperm.slane %v2533_v2, 0 }
 0x428   :  { %v2515_v50 = vpop.f32.mrf.mxu0 }
 0x42b   :  { %v2517_v24 = vpop.f32.mrf.mxu1 }
 0x430   :  { %v790_v43 = vpop.f32.mrf.mxu0 }
 0x433   :  { %v803_v6 = vpop.f32.mrf.mxu1 }
 0x43d   :  { %v1145_v12 = vpop.f32.mrf.mxu3 }
 0x43e   :  { %v1132_v58 = vpop.f32.mrf.mxu2 }
 0x445   :  { %v1147_v49 = vpop.f32.mrf.mxu3 }
 0x446   :  { %v1134_v31 = vpop.f32.mrf.mxu2  ;;  %v1201_v49 = vld [vmem:[%s2671_s8] sm:$0xf] }
 0x448   :  { %v1106_v23 = vpop.f32.mrf.mxu0 }
 0x449   :  { %v1119_v59 = vpop.f32.mrf.mxu1 }
 0x44a   :  { %v1120_v1 = vadd.f32 %v1119_v59, %v1106_v23 }
 0x44c   :  { %v1133_v18 = vadd.f32 %v1132_v58, %v1120_v1 }
 0x44e   :  { %v1146_v52 = vadd.f32 %v1145_v12, %v1133_v18 }
 0x450   :  { %1174 = vrot.lane.b32.xlu1 %v1146_v52, %s1662_s1  ;;  %1166 = vrot.lane.b32.xlu2 %v1146_v52, %s1656_s28  ;;  %v1108_v34 = vpop.f32.mrf.mxu0 }
 0x451   :  { %1178 = vrot.lane.b32.xlu0 %v1146_v52, %s1663_s26  ;;  %v1121_v9 = vpop.f32.mrf.mxu1 }
 0x452   :  { %v1668_v9 = vmov 128.0  }
 0x453   :  { %1644 = vrcp.f32 %v1668_v9 }
 0x458   :  { %1162 = vrot.lane.b32.xlu1 %v1146_v52, %s1655_s27  ;;  %1154 = vrot.lane.b32.xlu2 %v1146_v52, %s1664_s29 }
 0x459   :  { %1170 = vrot.lane.b32.xlu0 %v1146_v52, %s1665_s30 }
 0x460   :  { %1158 = vrot.lane.b32.xlu2 %v1146_v52, %s1666_s13  ;;  %1204 = vperm.xlu1 %1633, %v1149_v29  }
 0x461   :  { %1150 = vrot.lane.b32.xlu0 %v1146_v52, %s1667_s14 }
 0x4aa   :  { %v1167_v37 = vpop.permute.xlu2 %1166 }
 0x4ab   :  { %v1169_v36 = vmul.f32 %v1168_v26, %v1167_v37 }
 0x4ad   :  { %v1189_v28 = vrot.slane %v1169_v36, 4 }
 0x4af   :  { %v1196_v53 = vsel %vm438_vm8, %v1146_v52, %v1189_v28 }
 0x4b2   :  { %v1155_v15 = vpop.permute.xlu2 %1154 }
 0x4b3   :  { %v1157_v46 = vmul.f32 %v1156_v25, %v1155_v15 }
 0x4b5   :  { %v1183_v58 = vrot.slane %v1157_v46, 4 }
 0x4ba   :  { %v1159_v44 = vpop.permute.xlu2 %1158 }
 0x4bb   :  { %v1161_v12 = vmul.f32 %v1160_v3, %v1159_v44 }
 0x4c2   :  { %v1175_v60 = vpop.permute.xlu1 %1174 }
 0x4c3   :  { %v1179_v63 = vpop.permute.xlu0 %1178  ;;  %v1177_v20 = vmul.f32 %v1176_v10, %v1175_v60 }
 0x4c4   :  { %v1181_v14 = vmul.f32 %v2538_v55, %v1179_v63 }
 0x4c5   :  { %v1192_v19 = vrot.slane %v1177_v20, 4 }
 0x4c6   :  { %v1200_v61 = vpack.c.bf16 %v1181_v14, %v1181_v14 }
 0x4c8   :  { %v1211_v41 = vsel %vm477_vm9, %v1200_v61, 0 }
 0x4c9   :  { %1218 = vmatpush.bf16.msrb.mxu0 %v1211_v41 }
 0x4ca   :  { %v1163_v30 = vpop.permute.xlu1 %1162 }
 0x4cb   :  { %v1171_v42 = vpop.permute.xlu0 %1170  ;;  %v1165_v38 = vmul.f32 %v1164_v39, %v1163_v30 }
 0x4cc   :  { %v1173_v54 = vmul.f32 %v1172_v4, %v1171_v42  ;;  %v1578_v42 = vld [vmem:[%s2670_s9 + $0x8] sm:$0xff] }
 0x4cd   :  { %v1186_v43 = vrot.slane %v1165_v38, 4 }
 0x4ce   :  { %v1197_v48 = vsel %vm438_vm8, %v1173_v54, %v1192_v19 }
 0x4cf   :  { %v1199_v57 = vpack.c.bf16 %v1197_v48, %v1196_v53  ;;  %v1195_v1 = vsel %vm438_vm8, %v1161_v12, %v1186_v43  ;;  %v1579_v53 = vld [vmem:[%s2670_s9 + $0x10] sm:$0xff] }
 0x4d1   :  { %1219 = vmatpush.bf16.msrb.mxu0 %v1199_v57 }
 0x4d2   :  { %v1205_v18 = vpop.permute.xlu1 %1204 }
 0x4d3   :  { %v1151_v6 = vpop.permute.xlu0 %1150 }
 0x4d4   :  { %v1153_v23 = vmul.f32 %v1152_v22, %v1151_v6  ;;  %v1271_v6 = vld [vmem:[%s2672_s11] sm:$0xff] }
 0x4d6   :  { %v1194_v59 = vsel %vm438_vm8, %v1153_v23, %v1183_v58  ;;  %v608_v58 = vld [vmem:[%s2673_s7] sm:$0xff] }
 0x4d7   :  { %v1198_v31 = vpack.c.bf16 %v1195_v1, %v1194_v59 }
 0x4d9   :  { %1220 = vmatpush.bf16.msrb.mxu0 %v1198_v31 }
 0x4dc   :  { %1577 = vmatmul.msk.bf16.vlgmr.msrb.gmra.mxu0 %vm473_vm10, %v1201_v49 }
 0x4dd   :  { %1391 = vmatpush.bf16.xpose.msra.mxu0 %v2334_v7 }
 0x4e5   :  { %1392 = vmatpush.bf16.xpose.msra.mxu0 %v2353_v0  ;;  %v1645_v0 = vpop.eup %1644 }
 0x4e6   :  { %v1233_v29 = vmul.f32 128.0, %v1645_v0  ;;  %vm1237_vm0 = vweird.f32 %v1645_v0 }
 0x4ed   :  { %1393 = vmatpush.bf16.xpose.msra.mxu0 %v2375_v5  ;;  %v1234_v5 = vsub.f32 1.0, %v1233_v29 }
 0x4ef   :  { %v1235_v37 = vmul.f32 %v1645_v0, %v1234_v5 }
 0x4f5   :  { %1394 = vmatpush.bf16.xpose.msra.mxu0 %v2391_v51  ;;  %v1236_v51 = vadd.f32 %v1645_v0, %v1235_v37 }
 0x4fd   :  { %1395 = vmatpush.bf16.xpose.msra.mxu0 %v2422_v16  ;;  %v2579_v16 = vsel %vm1237_vm0, %v1645_v0, %v1236_v51 }
 0x505   :  { %1396 = vmatpush.bf16.xpose.msra.mxu0 %v2440_v62 }
 0x50d   :  { %1397 = vmatpush.bf16.xpose.msra.mxu0 %v2460_v35 }
 0x515   :  { %1398 = vmatpush.bf16.xpose.msra.mxu0 %v2478_v47 }
 0x559   :  { %v1222_v52 = vpop.f32.mrf.mxu0 }
 0x55a   :  { %v1223_v34 = vadd.f32 %v1222_v52, %v1205_v18  ;;  %v1582_v52 = vld [vmem:[%s2672_s11 + $0x10] sm:$0xff] }
 0x55c   :  { %1230 = vadd.xlane.f32.xlu0 %v1223_v34 }
 0x561   :  { %v1224_v7 = vpop.f32.mrf.mxu0 }
 0x5cf   :  { %v1231_v62 = vpop.xlane.xlu0 %1230 }
 0x5d0   :  { %v1239_v35 = vmul.f32 %v2579_v16, %v1231_v62 }
 0x5d2   :  { %v1240_v60 = vsub.f32 %v1223_v34, %v1239_v35 }
 0x5d4   :  { %v1241_v47 = vmul.f32 %v1240_v60, %v1240_v60 }
 0x5d6   :  { %1242 = vadd.xlane.f32.xlu2 %v1241_v47 }
 0x649   :  { %v1243_v63 = vpop.xlane.xlu2 %1242 }
 0x64a   :  { %v1244_v14 = vmul.f32 %v1243_v63, %v2579_v16 }
 0x64c   :  { %v1245_v36 = vmax.f32 %v1244_v14, 0.0 }
 0x64e   :  { %v1246_v61 = vadd.f32 1e-05, %v1245_v36 }
 0x650   :  { %1646 = vrsqrt.f32 %v1246_v61  ;;  %vm1253_vm2 = vweird.f32 %v1246_v61 }
 0x656   :  { %v1647_v15 = vpop.eup %1646 }
 0x657   :  { %v1248_v20 = vmul.f32 %v1647_v15, %v1246_v61  ;;  %vm1254_vm1 = vweird.f32 %v1647_v15 }
 0x658   :  { %vm1255_vm3 = vmor %vm1253_vm2, %vm1254_vm1 }
 0x659   :  { %v1249_v41 = vmul.f32 %v1647_v15, %v1248_v20 }
 0x65b   :  { %v1250_v28 = vmul.f32 0.5, %v1249_v41 }
 0x65d   :  { %v1251_v30 = vsub.f32 1.5, %v1250_v28 }
 0x65f   :  { %v1252_v19 = vmul.f32 %v1647_v15, %v1251_v30 }
 0x661   :  { %v1256_v54 = vsel %vm1255_vm3, %v1647_v15, %v1252_v19  ;;  %v1581_v15 = vld [vmem:[%s2672_s11 + $0x8] sm:$0xff] }
 0x662   :  { %v1257_v38 = vmul.f32 %v1578_v42, %v1256_v54 }
 0x664   :  { %1260 = vperm.xlu1 %1633, %v1257_v38  }
 0x66c   :  { %1266 = vperm.xlu1 %1633, %v1579_v53  }
 0x6d6   :  { %v1261_v48 = vpop.permute.xlu1 %1260 }
 0x6d7   :  { %v1263_v57 = vmul.f32 %v1261_v48, %v1240_v60 }
 0x6de   :  { %v1267_v46 = vpop.permute.xlu1 %1266 }
 0x6df   :  { %v1269_v44 = vadd.f32 %v1267_v46, %v1263_v57 }
 0x6e1   :  { %v1270_v43 = vmax.f32 %v1269_v44, 0.0 }
 0x6e3   :  { %1278 = vrot.lane.b32.xlu2 %v1270_v43, %s1666_s13  ;;  %1284 = vrot.lane.b32.xlu0 %v1270_v43, %s1656_s28 }
 0x6e4   :  { %1293 = vrot.lane.b32.xlu1 %v1270_v43, %s1663_s26 }
 0x6eb   :  { %1304 = vperm.xlu0 %1634, %v1271_v6  }
 0x6ec   :  { %1287 = vrot.lane.b32.xlu1 %v1270_v43, %s1665_s30 }
 0x6f3   :  { %760 = vperm.xlu0 %1634, %v608_v58  }
 0x6f4   :  { %1290 = vrot.lane.b32.xlu1 %v1270_v43, %s1662_s1 }
 0x6fb   :  { %1359 = vperm.xlu0 %1634, %v1582_v52  }
 0x6fc   :  { %1281 = vrot.lane.b32.xlu1 %v1270_v43, %s1655_s27 }
 0x704   :  { %1272 = vrot.lane.b32.xlu1 %v1270_v43, %s1667_s14 }
 0x70c   :  { %1275 = vrot.lane.b32.xlu1 %v1270_v43, %s1664_s29 }
 0x73d   :  { %v1279_v0 = vpop.permute.xlu2 %1278 }
 0x73e   :  { %v1280_v37 = vmul.f32 %v1279_v0, %v1160_v3  ;;  %v1301_v3 = vld [vmem:[%s2674_s10] sm:$0xf] }
 0x755   :  { %v1285_v49 = vpop.permute.xlu0 %1284 }
 0x756   :  { %v1294_v12 = vpop.permute.xlu1 %1293 }
 0x757   :  { %v1295_v23 = vmul.f32 %v2538_v55, %v1294_v12  ;;  %v1286_v55 = vmul.f32 %v1285_v49, %v1168_v26 }
 0x759   :  { %v1300_v59 = vpack.c.bf16 %v1295_v23, %v1295_v23  ;;  %v1298_v29 = vpack.c.bf16 %v1286_v55, %v1270_v43 }
 0x75b   :  { %v1311_v1 = vsel %vm438_vm8, %v1300_v59, 0 }
 0x75c   :  { %1316 = vmatpush.bf16.msra.mxu1 %v1311_v1 }
 0x75d   :  { %v1305_v2 = vpop.permute.xlu0 %1304 }
 0x75e   :  { %v1288_v31 = vpop.permute.xlu1 %1287 }
 0x75f   :  { %v1289_v34 = vmul.f32 %v1288_v31, %v1172_v4 }
 0x766   :  { %v1291_v18 = vpop.permute.xlu1 %1290 }
 0x767   :  { %v1292_v7 = vmul.f32 %v1291_v18, %v1176_v10 }
 0x769   :  { %v1299_v9 = vpack.c.bf16 %v1292_v7, %v1289_v34  ;;  %v1448_v7 = vld [vmem:[%s2673_s7 + $0x10] sm:$0xff] }
 0x76b   :  { %1317 = vmatpush.bf16.msra.mxu1 %v1299_v9 }
 0x76e   :  { %v1282_v5 = vpop.permute.xlu1 %1281 }
 0x76f   :  { %v1283_v51 = vmul.f32 %v1282_v5, %v1164_v39  ;;  %1318 = vmatpush.bf16.msra.mxu1 %v1298_v29 }
 0x771   :  { %v1297_v4 = vpack.c.bf16 %v1283_v51, %v1280_v37 }
 0x773   :  { %1319 = vmatpush.bf16.msra.mxu1 %v1297_v4 }
 0x776   :  { %v1273_v62 = vpop.permute.xlu1 %1272 }
 0x777   :  { %v1274_v35 = vmul.f32 %v1273_v62, %v1152_v22 }
 0x77e   :  { %v1276_v10 = vpop.permute.xlu1 %1275 }
 0x77f   :  { %v1277_v26 = vmul.f32 %v1276_v10, %v1156_v25 }
 0x781   :  { %v1296_v60 = vpack.c.bf16 %v1277_v26, %v1274_v35 }
 0x783   :  { %1320 = vmatpush.bf16.msra.mxu1 %v1296_v60 }
 0x786   :  { %1580 = vmatmul.msk.bf16.vlgmr.msra.gmra.mxu1 %vm763_vm15, %v1301_v3 }
 0x787   :  { %1404 = vmatpush.bf16.xpose.msrb.mxu1 %v2329_v32 }
 0x78f   :  { %1405 = vmatpush.bf16.xpose.msrb.mxu1 %v2340_v17 }
 0x797   :  { %1406 = vmatpush.bf16.xpose.msrb.mxu1 %v2380_v21 }
 0x79f   :  { %1407 = vmatpush.bf16.xpose.msrb.mxu1 %v2396_v11 }
 0x7a7   :  { %1408 = vmatpush.bf16.xpose.msrb.mxu1 %v2427_v56 }
 0x7af   :  { %1409 = vmatpush.bf16.xpose.msrb.mxu1 %v2445_v27 }
 0x7b7   :  { %1410 = vmatpush.bf16.xpose.msrb.mxu1 %v2465_v40 }
 0x7bf   :  { %1411 = vmatpush.bf16.xpose.msrb.mxu1 %v2483_v13 }
 0x803   :  { %v1322_v39 = vpop.f32.mrf.mxu1 }
 0x804   :  { %v1323_v25 = vadd.f32 %v1322_v39, %v1305_v2 }
 0x806   :  { %1330 = vadd.xlane.f32.xlu2 %v1323_v25 }
 0x80b   :  { %v1324_v32 = vpop.f32.mrf.mxu1 }
 0x80c   :  { %v1447_v32 = vld [vmem:[%s2673_s7 + $0x8] sm:$0xff] }
 0x879   :  { %v1331_v22 = vpop.xlane.xlu2 %1330 }
 0x87a   :  { %v1332_v17 = vmul.f32 %v1331_v22, %v2579_v16 }
 0x87c   :  { %v1333_v47 = vsub.f32 %v1323_v25, %v1332_v17 }
 0x87e   :  { %v1334_v21 = vmul.f32 %v1333_v47, %v1333_v47 }
 0x880   :  { %1335 = vadd.xlane.f32.xlu1 %v1334_v21 }
 0x8f3   :  { %v1336_v11 = vpop.xlane.xlu1 %1335 }
 0x8f4   :  { %v1337_v56 = vmul.f32 %v1336_v11, %v2579_v16  ;;  %v761_v16 = vpop.permute.xlu0 %760 }
 0x8f5   :  { %v789_v30 = vadd.f32 %v2515_v50, %v761_v16  ;;  %v802_v42 = vadd.f32 %v2517_v24, %v761_v16  ;;  %v815_v54 = vadd.f32 %v2513_v45, %v761_v16  ;;  %v828_v53 = vadd.f32 %v2511_v8, %v761_v16 }
 0x8f6   :  { %v1338_v63 = vmax.f32 %v1337_v56, 0.0 }
 0x8f7   :  { %v835_v19 = vadd.f32 %v802_v42, %v789_v30 }
 0x8f8   :  { %v1339_v27 = vadd.f32 1e-05, %v1338_v63 }
 0x8f9   :  { %v836_v38 = vadd.f32 %v835_v19, %v815_v54 }
 0x8fa   :  { %1648 = vrsqrt.f32 %v1339_v27  ;;  %vm1346_vm5 = vweird.f32 %v1339_v27 }
 0x8fb   :  { %v837_v48 = vadd.f32 %v836_v38, %v828_v53 }
 0x8fc   :  { %v1360_v57 = vpop.permute.xlu0 %1359 }
 0x900   :  { %v1649_v40 = vpop.eup %1648 }
 0x901   :  { %v1341_v14 = vmul.f32 %v1649_v40, %v1339_v27  ;;  %vm1347_vm4 = vweird.f32 %v1649_v40 }
 0x902   :  { %vm1348_vm6 = vmor %vm1346_vm5, %vm1347_vm4 }
 0x903   :  { %v1342_v13 = vmul.f32 %v1649_v40, %v1341_v14 }
 0x905   :  { %v1343_v36 = vmul.f32 0.5, %v1342_v13 }
 0x907   :  { %v1344_v61 = vsub.f32 1.5, %v1343_v36 }
 0x909   :  { %v1345_v20 = vmul.f32 %v1649_v40, %v1344_v61 }
 0x90b   :  { %v1349_v41 = vsel %vm1348_vm6, %v1649_v40, %v1345_v20 }
 0x90c   :  { %v1350_v28 = vmul.f32 %v1581_v15, %v1349_v41 }
 0x90e   :  { %1353 = vperm.xlu0 %1634, %v1350_v28  }
 0x938   :  { %838 = vadd.xlane.f32.xlu0 %v837_v48 }
 0x980   :  { %v1354_v46 = vpop.permute.xlu0 %1353 }
 0x981   :  { %v1356_v44 = vmul.f32 %v1354_v46, %v1333_v47 }
 0x983   :  { %v1362_v43 = vadd.f32 %v1360_v57, %v1356_v44 }
 0x985   :  { %v1363_v6 = vmax.f32 %v1362_v43, 0.0 }
 0x987   :  { %v1364_v58 = vpack.c.bf16 %v1363_v6, %v1363_v6 }
 0x989   :  { %1373 = vmatmul.bf16.vlgmr.msra.gmra.mxu2 %v1364_v58  ;;  %1386 = vmatmul.bf16.vlgmr.msrb.gmra.mxu3 %v1364_v58 }
 0x98a   :  { %1399 = vmatmul.bf16.vlgmr.msra.gmra.mxu0 %v1364_v58  ;;  %1412 = vmatmul.bf16.vlgmr.msrb.gmra.mxu1 %v1364_v58 }
 0x9ab   :  { %v839_v50 = vpop.xlane.xlu0 %838 }
 0x9ac   :  { %v840_v24 = vmul.f32 %v839_v50, %v2141_v33 }
 0x9ae   :  { %v841_v12 = vsub.f32 %v789_v30, %v840_v24  ;;  %v842_v45 = vsub.f32 %v802_v42, %v840_v24  ;;  %v843_v23 = vsub.f32 %v815_v54, %v840_v24  ;;  %v844_v59 = vsub.f32 %v828_v53, %v840_v24 }
 0x9b0   :  { %v845_v8 = vmul.f32 %v841_v12, %v841_v12  ;;  %v846_v1 = vmul.f32 %v842_v45, %v842_v45  ;;  %v847_v31 = vmul.f32 %v843_v23, %v843_v23  ;;  %v848_v18 = vmul.f32 %v844_v59, %v844_v59 }
 0x9b2   :  { %v849_v49 = vadd.f32 %v846_v1, %v845_v8 }
 0x9b4   :  { %v850_v52 = vadd.f32 %v849_v49, %v847_v31 }
 0x9b6   :  { %v851_v34 = vadd.f32 %v850_v52, %v848_v18 }
 0x9b8   :  { %852 = vadd.xlane.f32.xlu2 %v851_v34 }
 0x9d0   :  { %879 = vperm.xlu2 %1632, %v1448_v7  }
 0xa07   :  { %v1400_v55 = vpop.f32.mrf.mxu0  ;;  %v1413_v9 = vpop.f32.mrf.mxu1 }
 0xa08   :  { %v1419_v61 = vmul.f32 4.0, %v1400_v55  ;;  %v1420_v15 = vmul.f32 4.0, %v1413_v9 }
 0xa0c   :  { %v1374_v0 = vpop.f32.mrf.mxu2  ;;  %v1387_v29 = vpop.f32.mrf.mxu3 }
 0xa0d   :  { %v1417_v20 = vmul.f32 4.0, %v1374_v0  ;;  %v1418_v41 = vmul.f32 4.0, %v1387_v29 }
 0xa0f   :  { %v1402_v5 = vpop.f32.mrf.mxu0  ;;  %v1415_v37 = vpop.f32.mrf.mxu1 }
 0xa14   :  { %v1376_v51 = vpop.f32.mrf.mxu2  ;;  %v1389_v4 = vpop.f32.mrf.mxu3 }
 0xa2b   :  { %v853_v62 = vpop.xlane.xlu2 %852 }
 0xa2c   :  { %v854_v10 = vmul.f32 %v853_v62, %v2141_v33 }
 0xa2e   :  { %v855_v35 = vmax.f32 %v854_v10, 0.0 }
 0xa30   :  { %v856_v26 = vadd.f32 1e-05, %v855_v35 }
 0xa32   :  { %1650 = vrsqrt.f32 %v856_v26  ;;  %vm863_vm8 = vweird.f32 %v856_v26 }
 0xa33   :  { %v880_v27 = vpop.permute.xlu2 %879 }
 0xa38   :  { %v1651_v60 = vpop.eup %1650 }
 0xa39   :  { %v858_v3 = vmul.f32 %v1651_v60, %v856_v26  ;;  %vm864_vm7 = vweird.f32 %v1651_v60 }
 0xa3a   :  { %vm865_vm9 = vmor %vm863_vm8, %vm864_vm7 }
 0xa3b   :  { %v859_v2 = vmul.f32 %v1651_v60, %v858_v3 }
 0xa3d   :  { %v860_v39 = vmul.f32 0.5, %v859_v2 }
 0xa3f   :  { %v861_v25 = vsub.f32 1.5, %v860_v39 }
 0xa41   :  { %v862_v22 = vmul.f32 %v1651_v60, %v861_v25 }
 0xa43   :  { %v866_v17 = vsel %vm865_vm9, %v1651_v60, %v862_v22 }
 0xa44   :  { %v867_v47 = vmul.f32 %v1447_v32, %v866_v17 }
 0xa46   :  { %870 = vperm.xlu1 %1633, %v867_v47  }
 0xab8   :  { %v871_v33 = vpop.permute.xlu1 %870 }
 0xab9   :  { %v873_v21 = vmul.f32 %v871_v33, %v841_v12  ;;  %v874_v11 = vmul.f32 %v871_v33, %v842_v45  ;;  %v875_v56 = vmul.f32 %v871_v33, %v843_v23  ;;  %v876_v63 = vmul.f32 %v871_v33, %v844_v59 }
 0xabb   :  { %v882_v40 = vadd.f32 %v880_v27, %v873_v21  ;;  %v883_v14 = vadd.f32 %v880_v27, %v874_v11  ;;  %v884_v13 = vadd.f32 %v880_v27, %v875_v56  ;;  %v885_v36 = vadd.f32 %v880_v27, %v876_v63 }
 0xabd   :  { %v886_v28 = vmax.f32 %v882_v40, 0.0  ;;  %v887_v16 = vmax.f32 %v883_v14, 0.0  ;;  %v888_v30 = vmax.f32 %v884_v13, 0.0  ;;  %v889_v42 = vmax.f32 %v885_v36, 0.0 }
 0xabf   :  { %v1421_v19 = vmul.f32 %v1417_v20, %v886_v28  ;;  %v1422_v54 = vmul.f32 %v1418_v41, %v887_v16  ;;  %v1423_v38 = vmul.f32 %v1419_v61, %v888_v30  ;;  %v1424_v53 = vmul.f32 %v1420_v15, %v889_v42 }
 0xac1   :  { %v1425_v48 = vadd.f32 %v1421_v19, %v1417_v20  ;;  %v1426_v57 = vadd.f32 %v1422_v54, %v1418_v41  ;;  %v1427_v46 = vadd.f32 %v1423_v38, %v1419_v61  ;;  %v1428_v44 = vadd.f32 %v1424_v53, %v1420_v15 }
 0xac3   :  { %1429 = vst [vmem:[%s2675_s12] sm:$0xff] %v1425_v48 }
 0xac4   :  { %1430 = vst [vmem:[%s2675_s12 + $0x8] sm:$0xff] %v1426_v57 }
 0xac5   :  { %1431 = vst [vmem:[%s2675_s12 + $0x10] sm:$0xff] %v1427_v46 }
 0xac6   :  { %1432 = vst [vmem:[%s2675_s12 + $0x18] sm:$0xff] %v1428_v44 }

</bundles_post_ra>
